<compile_context>
chip_gen: v7x
topology: tpu7x:2x2x1
jax: 0.10.0
libtpu: 0.0.40
codegen_flags: <defaults>
</compile_context>

<pallas_src>
import functools
import math

import jax
import jax.numpy as jnp
import numpy as np
from jax import lax
from jax.experimental import pallas as pl
from jax.experimental.pallas import tpu as pltpu


# --------------------------------------------------------------------------------------
# helpers
# --------------------------------------------------------------------------------------
def _vmem_limit(*byte_counts):
    """Scoped-VMEM limit from the per-step block footprint (x2 double-buffer + headroom)."""
    est = 2 * int(sum(byte_counts)) + (4 << 20)
    return int(min(max(est, 16 << 20), 48 << 20))


def _seq_tile(s, dtype, cap=512):
    """Sequence tile: full extent if small, else the largest divisor of s that is a
    multiple of the sublane granule.  Exact division -> no partial blocks, so the fused
    cross-row reductions (pooling) stay correct."""
    if s <= cap:
        return s
    granule = 16 if jnp.dtype(dtype).itemsize == 2 else 8
    best = None
    for cand in range(granule, cap + 1, granule):
        if s % cand == 0:
            best = cand
    return best if best is not None else s


def _tf_tile(tf):
    if tf % 256 == 0 and tf > 256:
        return 256
    if tf % 128 == 0 and tf > 128:
        return 128
    return tf


def _positional_encoding(seq_len, embed_dim):
    """Normalized sinusoidal PE (matches the PyTorch PositionalEncoding buffer rows,
    including the per-row L2 normalization done in that module's __init__)."""
    assert embed_dim % 2 == 0, "embed_dim must be even for sin/cos interleave"
    pos = jnp.arange(seq_len, dtype=jnp.float32)[:, None]
    div = jnp.exp(jnp.arange(0, embed_dim, 2, dtype=jnp.float32)
                  * (-math.log(10000.0) / embed_dim))
    pe = jnp.zeros((seq_len, embed_dim), jnp.float32)
    pe = pe.at[:, 0::2].set(jnp.sin(pos * div))
    pe = pe.at[:, 1::2].set(jnp.cos(pos * div))
    return pe / jnp.linalg.norm(pe, axis=-1, keepdims=True)


# --------------------------------------------------------------------------------------
# kernel 1: fused (x + PE) @ Wq / Wk / Wv  (+ biases)
# --------------------------------------------------------------------------------------
def _qkv_kernel(x_ref, pe_ref, wq_ref, wk_ref, wv_ref, bq_ref, bk_ref, bv_ref,
                q_ref, k_ref, v_ref):
    # x_ref: (ts, D) storage dtype; pe_ref: (ts, D) f32 (grid-invariant across batch)
    h = (x_ref[...].astype(jnp.float32) + pe_ref[...]).astype(wq_ref.dtype)
    for w_ref, b_ref, o_ref in ((wq_ref, bq_ref, q_ref),
                                (wk_ref, bk_ref, k_ref),
                                (wv_ref, bv_ref, v_ref)):
        y = jnp.dot(h, w_ref[...], preferred_element_type=jnp.float32) + b_ref[...]
        o_ref[...] = y.astype(o_ref.dtype)


def qkv_project(x, pe, wq, wk, wv, bq, bk, bv):
    B, S, D = x.shape
    ts = _seq_tile(S, x.dtype)
    dsz = jnp.dtype(x.dtype).itemsize
    vmem = _vmem_limit(4 * ts * D * dsz, ts * D * 4, 3 * D * D * dsz, 3 * D * 4)

    xspec = pl.BlockSpec((None, ts, D), lambda s, b: (b, s, 0))
    wspec = pl.BlockSpec((D, D), lambda s, b: (0, 0))
    bspec = pl.BlockSpec((1, D), lambda s, b: (0, 0))
    out = jax.ShapeDtypeStruct((B, S, D), x.dtype)
    return pl.pallas_call(
        _qkv_kernel,
        out_shape=(out, out, out),
        grid_spec=pl.GridSpec(
            grid=(pl.cdiv(S, ts), B),                        # S-tiles OUTER, batch INNER
            in_specs=[xspec,
                      pl.BlockSpec((ts, D), lambda s, b: (s, 0)),   # PE ignores batch
                      wspec, wspec, wspec, bspec, bspec, bspec],
            out_specs=(xspec, xspec, xspec),
        ),
        compiler_params=pltpu.CompilerParams(
            dimension_semantics=("parallel", "parallel"), vmem_limit_bytes=vmem),
    )(x, pe, wq, wk, wv, bq, bk, bv)


# --------------------------------------------------------------------------------------
# kernel 2: multi-head attention — one batch element per grid step, all heads inside,
#           lane-dense (S, D) output written in a single store
# --------------------------------------------------------------------------------------
def _attention_kernel(q_ref, k_ref, v_ref, o_ref, *, num_heads, scale):
    S, D = q_ref.shape
    hd = D // num_heads
    # fold 1/sqrt(head_dim) into q before the QK^T dot
    q = (q_ref[...].astype(jnp.float32) * scale).astype(q_ref.dtype)
    k = k_ref[...]
    v = v_ref[...]
    outs = []
    for h in range(num_heads):                               # static unroll over heads
        sl = slice(h * hd, (h + 1) * hd)
        s = lax.dot_general(q[:, sl], k[:, sl], (((1,), (1,)), ((), ())),
                            preferred_element_type=jnp.float32)      # (S, S) f32
        m = jnp.max(s, axis=-1, keepdims=True)
        p = jnp.exp(s - m)
        l = jnp.sum(p, axis=-1, keepdims=True)
        attn = p * pl.reciprocal(l, approx=True)
        # TODO(synk): nn.Dropout(p=0.1) on attention weights omitted (eval-mode forward).
        outs.append(jnp.dot(attn.astype(v.dtype), v[:, sl],
                            preferred_element_type=jnp.float32))
    o_ref[...] = jnp.concatenate(outs, axis=-1).astype(o_ref.dtype)   # (S, D) lane-dense


def attention(q, k, v, *, num_heads):
    B, S, D = q.shape
    hd = D // num_heads
    scale = 1.0 / math.sqrt(hd)
    dsz = jnp.dtype(q.dtype).itemsize
    vmem = _vmem_limit(4 * S * D * dsz, S * S * 4, S * D * 4)

    spec = pl.BlockSpec((None, S, D), lambda b: (b, 0, 0))
    # TODO(synk): for long S, switch to flash-style KV tiling (online softmax) so the
    # (S, S) score tile fits v7x's smaller VMEM.
    return pl.pallas_call(
        functools.partial(_attention_kernel, num_heads=num_heads, scale=scale),
        out_shape=jax.ShapeDtypeStruct((B, S, D), q.dtype),
        grid_spec=pl.GridSpec(grid=(B,), in_specs=[spec, spec, spec], out_specs=spec),
        compiler_params=pltpu.CompilerParams(
            dimension_semantics=("parallel",), vmem_limit_bytes=vmem),
    )(q, k, v)


# --------------------------------------------------------------------------------------
# kernel 3: attention output projection + residual (x + PE, recomputed) + LayerNorm
# --------------------------------------------------------------------------------------
def _attn_out_ln_kernel(ao_ref, x_ref, pe_ref, w_ref, b_ref, g_ref, beta_ref, o_ref):
    proj = jnp.dot(ao_ref[...], w_ref[...], preferred_element_type=jnp.float32) + b_ref[...]
    resid = x_ref[...].astype(jnp.float32) + pe_ref[...]      # h = x + pe, never hits HBM
    s = resid + proj
    mu = jnp.mean(s, axis=-1, keepdims=True)
    c = s - mu
    var = jnp.mean(c * c, axis=-1, keepdims=True)
    inv = lax.rsqrt(var + 1e-5)
    o_ref[...] = (c * inv * g_ref[...] + beta_ref[...]).astype(o_ref.dtype)


def attn_out_residual_ln(ao, x, pe, w, b, g, beta):
    B, S, D = ao.shape
    ts = _seq_tile(S, ao.dtype)
    dsz = jnp.dtype(ao.dtype).itemsize
    vmem = _vmem_limit(3 * ts * D * dsz, ts * D * 4, D * D * dsz, 3 * D * 4)

    tspec = pl.BlockSpec((None, ts, D), lambda s, b_: (b_, s, 0))
    dvec = pl.BlockSpec((1, D), lambda s, b_: (0, 0))
    return pl.pallas_call(
        _attn_out_ln_kernel,
        out_shape=jax.ShapeDtypeStruct((B, S, D), ao.dtype),
        grid_spec=pl.GridSpec(
            grid=(pl.cdiv(S, ts), B),
            in_specs=[tspec, tspec,
                      pl.BlockSpec((ts, D), lambda s, b_: (s, 0)),
                      pl.BlockSpec((D, D), lambda s, b_: (0, 0)),
                      dvec, dvec, dvec],
            out_specs=tspec,
        ),
        compiler_params=pltpu.CompilerParams(
            dimension_semantics=("parallel", "parallel"), vmem_limit_bytes=vmem),
    )(ao, x, pe, w, b, g, beta)


# --------------------------------------------------------------------------------------
# kernel 4: fused FFN (relu(x@W1+b1)@W2 over TF chunks) + b2 + residual + LayerNorm
# --------------------------------------------------------------------------------------
def _ffn_ln_kernel(x_ref, w1_ref, b1_ref, w2_ref, b2_ref, g_ref, beta_ref, o_ref, acc_ref):
    t = pl.program_id(2)

    @pl.when(t == 0)
    def _():
        acc_ref[...] = jnp.zeros_like(acc_ref)

    hidden = jnp.dot(x_ref[...], w1_ref[...], preferred_element_type=jnp.float32) + b1_ref[...]
    hidden = jnp.maximum(hidden, 0.0).astype(w2_ref.dtype)
    acc_ref[...] += jnp.dot(hidden, w2_ref[...], preferred_element_type=jnp.float32)

    @pl.when(t == pl.num_programs(2) - 1)
    def _():
        s = acc_ref[...] + b2_ref[...] + x_ref[...].astype(jnp.float32)
        mu = jnp.mean(s, axis=-1, keepdims=True)
        c = s - mu
        var = jnp.mean(c * c, axis=-1, keepdims=True)
        inv = lax.rsqrt(var + 1e-5)
        o_ref[...] = (c * inv * g_ref[...] + beta_ref[...]).astype(o_ref.dtype)


def ffn_residual_ln(x, w1, b1, w2, b2, g, beta):
    B, S, D = x.shape
    TF = w1.shape[1]
    ts = _seq_tile(S, x.dtype)
    tt = _tf_tile(TF)
    dsz = jnp.dtype(x.dtype).itemsize
    vmem = _vmem_limit(2 * ts * D * dsz, 2 * D * tt * dsz, ts * tt * 4, ts * D * 4,
                       tt * 4, 3 * D * 4)

    xspec = pl.BlockSpec((None, ts, D), lambda s, b_, t: (b_, s, 0))
    dvec = pl.BlockSpec((1, D), lambda s, b_, t: (0, 0))
    return pl.pallas_call(
        _ffn_ln_kernel,
        out_shape=jax.ShapeDtypeStruct((B, S, D), x.dtype),
        grid_spec=pltpu.PrefetchScalarGridSpec(
            num_scalar_prefetch=0,
            grid=(pl.cdiv(S, ts), B, pl.cdiv(TF, tt)),       # TF reduction axis INNERMOST
            in_specs=[xspec,
                      pl.BlockSpec((D, tt), lambda s, b_, t: (0, t)),
                      pl.BlockSpec((1, tt), lambda s, b_, t: (0, t)),
                      pl.BlockSpec((tt, D), lambda s, b_, t: (t, 0)),
                      dvec, dvec, dvec],
            out_specs=xspec,
            scratch_shapes=[pltpu.VMEM((ts, D), jnp.float32)]),
        compiler_params=pltpu.CompilerParams(
            dimension_semantics=("parallel", "parallel", "arbitrary"),
            vmem_limit_bytes=vmem),
    )(x, w1, b1, w2, b2, g, beta)


# --------------------------------------------------------------------------------------
# kernel 5: mean over sequence (chunked) + classifier + sigmoid
# --------------------------------------------------------------------------------------
def _pool_classify_kernel(x_ref, w_ref, b_ref, o_ref, acc_ref, *, inv_seq_len):
    si = pl.program_id(0)

    @pl.when(si == 0)
    def _():
        acc_ref[...] = jnp.zeros_like(acc_ref)

    acc_ref[...] += jnp.sum(x_ref[...].astype(jnp.float32), axis=1)        # (B, D)

    @pl.when(si == pl.num_programs(0) - 1)
    def _():
        pooled = acc_ref[...] * inv_seq_len
        logit = jnp.sum(pooled * w_ref[...], axis=-1, keepdims=True) + b_ref[...]
        o_ref[...] = (1.0 / (1.0 + jnp.exp(-logit))).astype(o_ref.dtype)


def pool_classify(x, w_row, b):
    B, S, D = x.shape
    ts = _seq_tile(S, x.dtype)                       # divisor of S -> no padded rows in sum
    dsz = jnp.dtype(x.dtype).itemsize
    vmem = _vmem_limit(B * ts * D * dsz, B * D * 4, D * 4)
    return pl.pallas_call(
        functools.partial(_pool_classify_kernel, inv_seq_len=1.0 / S),
        out_shape=jax.ShapeDtypeStruct((B, 1), jnp.float32),
        grid_spec=pltpu.PrefetchScalarGridSpec(
            num_scalar_prefetch=0,
            grid=(pl.cdiv(S, ts),),
            in_specs=[pl.BlockSpec((B, ts, D), lambda s: (0, s, 0)),
                      pl.BlockSpec((1, D), lambda s: (0, 0)),
                      pl.BlockSpec((1, 1), lambda s: (0, 0))],
            out_specs=pl.BlockSpec((B, 1), lambda s: (0, 0)),
            scratch_shapes=[pltpu.VMEM((B, D), jnp.float32)]),
        compiler_params=pltpu.CompilerParams(
            dimension_semantics=("arbitrary",), vmem_limit_bytes=vmem),
    )(x, w_row, b)


# --------------------------------------------------------------------------------------
# full forward (from embedded tokens; batch-first layout (B, S, D))
# --------------------------------------------------------------------------------------
def transformer_forward(x, p, *, num_heads, compute_dtype=None):
    B, S, D = x.shape
    assert D % num_heads == 0
    dt = x.dtype if compute_dtype is None else jnp.dtype(compute_dtype)
    # TODO(synk): for D not a multiple of 128, pad D/head_dim to the lane width in the
    # wrapper (with masked LayerNorm stats) to avoid partial-lane vregs in every kernel.

    pe = _positional_encoding(S, D)                           # static, computed once (f32)
    xc = x.astype(dt)
    cast = lambda name: p[name].astype(dt)

    # 1) fused (x + PE) @ Wq/Wk/Wv
    q, k, v = qkv_project(xc, pe, cast("w_q"), cast("w_k"), cast("w_v"),
                          p["b_q"], p["b_k"], p["b_v"])
    # 2) multi-head attention, all heads per step, lane-dense (S, D) output
    ao = attention(q, k, v, num_heads=num_heads)
    # 3) output projection + residual (x + PE) + LayerNorm (fused epilogue)
    h3 = attn_out_residual_ln(ao, xc, pe, cast("w_out"), p["b_out"], p["g1"], p["beta1"])
    # 4) fused FFN + residual + LayerNorm
    h4 = ffn_residual_ln(h3, cast("w_ff1"), p["b_ff1"], cast("w_ff2"), p["b_ff2"],
                         p["g2"], p["beta2"])
    # 5) mean over sequence + classifier + sigmoid
    out = pool_classify(h4, p["w_cls"].reshape(1, D).astype(jnp.float32), p["b_cls"])
    return out[:, 0]                                          # squeeze -> (B,)


# --------------------------------------------------------------------------------------
# pure-JAX reference (same math, no Pallas) for correctness check
# --------------------------------------------------------------------------------------
def _layernorm_ref(x, g, b, eps=1e-5):
    mu = jnp.mean(x, axis=-1, keepdims=True)
    var = jnp.mean((x - mu) ** 2, axis=-1, keepdims=True)
    return (x - mu) / jnp.sqrt(var + eps) * g + b


def _reference_forward(x, p, *, num_heads):
    B, S, D = x.shape
    Hd = D // num_heads
    h = x + _positional_encoding(S, D)[None]

    q = h @ p["w_q"] + p["b_q"]
    k = h @ p["w_k"] + p["b_k"]
    v = h @ p["w_v"] + p["b_v"]

    def to_heads(t):
        return t.reshape(B, S, num_heads, Hd).transpose(0, 2, 1, 3)

    q, k, v = to_heads(q), to_heads(k), to_heads(v)
    scores = jnp.einsum("bhqd,bhkd->bhqk", q, k) / math.sqrt(Hd)
    attn = jax.nn.softmax(scores, axis=-1)
    ao = jnp.einsum("bhqk,bhkd->bhqd", attn, v)
    ao = ao.transpose(0, 2, 1, 3).reshape(B, S, D)
    ao = ao @ p["w_out"] + p["b_out"]
    h3 = _layernorm_ref(h + ao, p["g1"], p["beta1"])
    ff = jnp.maximum(h3 @ p["w_ff1"] + p["b_ff1"], 0.0)
    ff = ff @ p["w_ff2"] + p["b_ff2"]
    h4 = _layernorm_ref(h3 + ff, p["g2"], p["beta2"])
    pooled = h4.mean(axis=1)
    logit = pooled @ p["w_cls"] + p["b_cls"]
    return jax.nn.sigmoid(logit)[:, 0]


def init_params(key, D, tf_dim):
    ks = jax.random.split(key, 18)

    def dense(k, fan_in, fan_out):
        return jax.random.normal(k, (fan_in, fan_out), jnp.float32) / math.sqrt(fan_in)

    def bias(k, n):
        return 0.01 * jax.random.normal(k, (1, n), jnp.float32)

    return dict(
        w_q=dense(ks[0], D, D), b_q=bias(ks[1], D),
        w_k=dense(ks[2], D, D), b_k=bias(ks[3], D),
        w_v=dense(ks[4], D, D), b_v=bias(ks[5], D),
        w_out=dense(ks[6], D, D), b_out=bias(ks[7], D),
        g1=1.0 + 0.1 * jax.random.normal(ks[8], (1, D), jnp.float32),
        beta1=0.1 * jax.random.normal(ks[9], (1, D), jnp.float32),
        w_ff1=dense(ks[10], D, tf_dim), b_ff1=bias(ks[11], tf_dim),
        w_ff2=dense(ks[12], tf_dim, D), b_ff2=bias(ks[13], D),
        g2=1.0 + 0.1 * jax.random.normal(ks[14], (1, D), jnp.float32),
        beta2=0.1 * jax.random.normal(ks[15], (1, D), jnp.float32),
        w_cls=dense(ks[16], D, 1), b_cls=jnp.zeros((1, 1), jnp.float32),
    )


if __name__ == "__main__":
    B, S, D, H, TF = 2, 8, 128, 4, 256          # module defaults, small seq/batch
    key = jax.random.PRNGKey(0)
    kx, kp = jax.random.split(key)
    x = jax.random.normal(kx, (B, S, D), dtype=jnp.float32)
    params = init_params(kp, D, TF)

    ref = jax.block_until_ready(_reference_forward(x, params, num_heads=H))

    # f32 storage path (tight check)
    fwd_f32 = jax.jit(functools.partial(transformer_forward, num_heads=H,
                                        compute_dtype=jnp.float32))
    out_f32 = jax.block_until_ready(fwd_f32(x, params))
    np.testing.assert_allclose(np.asarray(out_f32), np.asarray(ref), rtol=2e-2, atol=2e-2)

    # bf16 storage / MXU-operand path (perf-preferred; compared against f32 reference)
    fwd_bf16 = jax.jit(functools.partial(transformer_forward, num_heads=H,
                                         compute_dtype=jnp.bfloat16))
    out_bf16 = jax.block_until_ready(fwd_bf16(x, params))
    np.testing.assert_allclose(np.asarray(out_bf16), np.asarray(ref), rtol=8e-2, atol=8e-2)

    assert out_f32.shape == (B,) and out_bf16.shape == (B,)
    print("KERNEL_OK")
</pallas_src>

<mosaic_0001>
module attributes {stable_mosaic.version = 11 : i64} {
  func.func @_attention_kernel(%arg0: i32, %arg1: memref<1x8x128xf32, #tpu.memory_space<vmem>>, %arg2: memref<1x8x128xf32, #tpu.memory_space<vmem>>, %arg3: memref<1x8x128xf32, #tpu.memory_space<vmem>>, %arg4: memref<1x8x128xf32, #tpu.memory_space<vmem>>) attributes {dimension_semantics = [#tpu.dimension_semantics<parallel>], iteration_bounds = array<i64: 2>, scalar_prefetch = 0 : i64, scratch_operands = 0 : i64, tpu.core_type = #tpu.core_type<tc>, window_params = [{transform_indices = @transform_0, window_bounds = array<i64: 1, 8, 128>}, {transform_indices = @transform_1, window_bounds = array<i64: 1, 8, 128>}, {transform_indices = @transform_2, window_bounds = array<i64: 1, 8, 128>}, {transform_indices = @transform_3, window_bounds = array<i64: 1, 8, 128>}]} {
    %c0 = arith.constant 0 : index
    %c0_0 = arith.constant 0 : index
    %c0_1 = arith.constant 0 : index
    %0 = vector.load %arg1[%c0, %c0_0, %c0_1] : memref<1x8x128xf32, #tpu.memory_space<vmem>>, vector<1x8x128xf32>
    %1 = vector.shape_cast %0 : vector<1x8x128xf32> to vector<8x128xf32>
    %cst = arith.constant 0.176776692 : f32
    %2 = vector.broadcast %cst : f32 to vector<8x128xf32>
    %3 = arith.mulf %1, %2 : vector<8x128xf32>
    %c0_2 = arith.constant 0 : index
    %c0_3 = arith.constant 0 : index
    %c0_4 = arith.constant 0 : index
    %4 = vector.load %arg2[%c0_2, %c0_3, %c0_4] : memref<1x8x128xf32, #tpu.memory_space<vmem>>, vector<1x8x128xf32>
    %5 = vector.shape_cast %4 : vector<1x8x128xf32> to vector<8x128xf32>
    %c0_5 = arith.constant 0 : index
    %c0_6 = arith.constant 0 : index
    %c0_7 = arith.constant 0 : index
    %6 = vector.load %arg3[%c0_5, %c0_6, %c0_7] : memref<1x8x128xf32, #tpu.memory_space<vmem>>, vector<1x8x128xf32>
    %7 = vector.shape_cast %6 : vector<1x8x128xf32> to vector<8x128xf32>
    %8 = vector.extract_strided_slice %3 {offsets = [0, 0], sizes = [8, 32], strides = [1, 1]} : vector<8x128xf32> to vector<8x32xf32>
    %9 = vector.extract_strided_slice %5 {offsets = [0, 0], sizes = [8, 32], strides = [1, 1]} : vector<8x128xf32> to vector<8x32xf32>
    %cst_8 = arith.constant dense<0.000000e+00> : vector<8x8xf32>
    %10 = tpu.matmul %8, %9, %cst_8 {dimension_numbers = #tpu.dot_dimension_numbers<[1], [1], [0], [0], [0, 0, 1, 0], [], []>} : vector<8x32xf32>, vector<8x32xf32>, vector<8x8xf32> -> vector<8x8xf32>
    %cst_9 = arith.constant dense<0xFF800000> : vector<8xf32>
    %11 = vector.multi_reduction <maximumf>, %10, %cst_9 [1] : vector<8x8xf32> to vector<8xf32>
    %12 = vector.shape_cast %11 : vector<8xf32> to vector<8x1xf32>
    %13 = vector.broadcast %12 : vector<8x1xf32> to vector<8x8xf32>
    %14 = arith.subf %10, %13 : vector<8x8xf32>
    %15 = math.exp %14 : vector<8x8xf32>
    %cst_10 = arith.constant dense<0.000000e+00> : vector<8xf32>
    %16 = vector.multi_reduction <add>, %15, %cst_10 [1] : vector<8x8xf32> to vector<8xf32>
    %17 = vector.shape_cast %16 : vector<8xf32> to vector<8x1xf32>
    %18 = tpu.reciprocal %17 {approx = true} : vector<8x1xf32> -> vector<8x1xf32>
    %19 = vector.broadcast %18 : vector<8x1xf32> to vector<8x8xf32>
    %20 = arith.mulf %15, %19 : vector<8x8xf32>
    %21 = vector.extract_strided_slice %7 {offsets = [0, 0], sizes = [8, 32], strides = [1, 1]} : vector<8x128xf32> to vector<8x32xf32>
    %cst_11 = arith.constant dense<0.000000e+00> : vector<8x32xf32>
    %22 = tpu.matmul %20, %21, %cst_11 {dimension_numbers = #tpu.dot_dimension_numbers<[1], [0], [0], [1], [0, 0, 1, 1], [], []>} : vector<8x8xf32>, vector<8x32xf32>, vector<8x32xf32> -> vector<8x32xf32>
    %23 = vector.extract_strided_slice %3 {offsets = [0, 32], sizes = [8, 32], strides = [1, 1]} : vector<8x128xf32> to vector<8x32xf32>
    %24 = vector.extract_strided_slice %5 {offsets = [0, 32], sizes = [8, 32], strides = [1, 1]} : vector<8x128xf32> to vector<8x32xf32>
    %cst_12 = arith.constant dense<0.000000e+00> : vector<8x8xf32>
    %25 = tpu.matmul %23, %24, %cst_12 {dimension_numbers = #tpu.dot_dimension_numbers<[1], [1], [0], [0], [0, 0, 1, 0], [], []>} : vector<8x32xf32>, vector<8x32xf32>, vector<8x8xf32> -> vector<8x8xf32>
    %cst_13 = arith.constant dense<0xFF800000> : vector<8xf32>
    %26 = vector.multi_reduction <maximumf>, %25, %cst_13 [1] : vector<8x8xf32> to vector<8xf32>
    %27 = vector.shape_cast %26 : vector<8xf32> to vector<8x1xf32>
    %28 = vector.broadcast %27 : vector<8x1xf32> to vector<8x8xf32>
    %29 = arith.subf %25, %28 : vector<8x8xf32>
    %30 = math.exp %29 : vector<8x8xf32>
    %cst_14 = arith.constant dense<0.000000e+00> : vector<8xf32>
    %31 = vector.multi_reduction <add>, %30, %cst_14 [1] : vector<8x8xf32> to vector<8xf32>
    %32 = vector.shape_cast %31 : vector<8xf32> to vector<8x1xf32>
    %33 = tpu.reciprocal %32 {approx = true} : vector<8x1xf32> -> vector<8x1xf32>
    %34 = vector.broadcast %33 : vector<8x1xf32> to vector<8x8xf32>
    %35 = arith.mulf %30, %34 : vector<8x8xf32>
    %36 = vector.extract_strided_slice %7 {offsets = [0, 32], sizes = [8, 32], strides = [1, 1]} : vector<8x128xf32> to vector<8x32xf32>
    %cst_15 = arith.constant dense<0.000000e+00> : vector<8x32xf32>
    %37 = tpu.matmul %35, %36, %cst_15 {dimension_numbers = #tpu.dot_dimension_numbers<[1], [0], [0], [1], [0, 0, 1, 1], [], []>} : vector<8x8xf32>, vector<8x32xf32>, vector<8x32xf32> -> vector<8x32xf32>
    %38 = vector.extract_strided_slice %3 {offsets = [0, 64], sizes = [8, 32], strides = [1, 1]} : vector<8x128xf32> to vector<8x32xf32>
    %39 = vector.extract_strided_slice %5 {offsets = [0, 64], sizes = [8, 32], strides = [1, 1]} : vector<8x128xf32> to vector<8x32xf32>
    %cst_16 = arith.constant dense<0.000000e+00> : vector<8x8xf32>
    %40 = tpu.matmul %38, %39, %cst_16 {dimension_numbers = #tpu.dot_dimension_numbers<[1], [1], [0], [0], [0, 0, 1, 0], [], []>} : vector<8x32xf32>, vector<8x32xf32>, vector<8x8xf32> -> vector<8x8xf32>
    %cst_17 = arith.constant dense<0xFF800000> : vector<8xf32>
    %41 = vector.multi_reduction <maximumf>, %40, %cst_17 [1] : vector<8x8xf32> to vector<8xf32>
    %42 = vector.shape_cast %41 : vector<8xf32> to vector<8x1xf32>
    %43 = vector.broadcast %42 : vector<8x1xf32> to vector<8x8xf32>
    %44 = arith.subf %40, %43 : vector<8x8xf32>
    %45 = math.exp %44 : vector<8x8xf32>
    %cst_18 = arith.constant dense<0.000000e+00> : vector<8xf32>
    %46 = vector.multi_reduction <add>, %45, %cst_18 [1] : vector<8x8xf32> to vector<8xf32>
    %47 = vector.shape_cast %46 : vector<8xf32> to vector<8x1xf32>
    %48 = tpu.reciprocal %47 {approx = true} : vector<8x1xf32> -> vector<8x1xf32>
    %49 = vector.broadcast %48 : vector<8x1xf32> to vector<8x8xf32>
    %50 = arith.mulf %45, %49 : vector<8x8xf32>
    %51 = vector.extract_strided_slice %7 {offsets = [0, 64], sizes = [8, 32], strides = [1, 1]} : vector<8x128xf32> to vector<8x32xf32>
    %cst_19 = arith.constant dense<0.000000e+00> : vector<8x32xf32>
    %52 = tpu.matmul %50, %51, %cst_19 {dimension_numbers = #tpu.dot_dimension_numbers<[1], [0], [0], [1], [0, 0, 1, 1], [], []>} : vector<8x8xf32>, vector<8x32xf32>, vector<8x32xf32> -> vector<8x32xf32>
    %53 = vector.extract_strided_slice %3 {offsets = [0, 96], sizes = [8, 32], strides = [1, 1]} : vector<8x128xf32> to vector<8x32xf32>
    %54 = vector.extract_strided_slice %5 {offsets = [0, 96], sizes = [8, 32], strides = [1, 1]} : vector<8x128xf32> to vector<8x32xf32>
    %cst_20 = arith.constant dense<0.000000e+00> : vector<8x8xf32>
    %55 = tpu.matmul %53, %54, %cst_20 {dimension_numbers = #tpu.dot_dimension_numbers<[1], [1], [0], [0], [0, 0, 1, 0], [], []>} : vector<8x32xf32>, vector<8x32xf32>, vector<8x8xf32> -> vector<8x8xf32>
    %cst_21 = arith.constant dense<0xFF800000> : vector<8xf32>
    %56 = vector.multi_reduction <maximumf>, %55, %cst_21 [1] : vector<8x8xf32> to vector<8xf32>
    %57 = vector.shape_cast %56 : vector<8xf32> to vector<8x1xf32>
    %58 = vector.broadcast %57 : vector<8x1xf32> to vector<8x8xf32>
    %59 = arith.subf %55, %58 : vector<8x8xf32>
    %60 = math.exp %59 : vector<8x8xf32>
    %cst_22 = arith.constant dense<0.000000e+00> : vector<8xf32>
    %61 = vector.multi_reduction <add>, %60, %cst_22 [1] : vector<8x8xf32> to vector<8xf32>
    %62 = vector.shape_cast %61 : vector<8xf32> to vector<8x1xf32>
    %63 = tpu.reciprocal %62 {approx = true} : vector<8x1xf32> -> vector<8x1xf32>
    %64 = vector.broadcast %63 : vector<8x1xf32> to vector<8x8xf32>
    %65 = arith.mulf %60, %64 : vector<8x8xf32>
    %66 = vector.extract_strided_slice %7 {offsets = [0, 96], sizes = [8, 32], strides = [1, 1]} : vector<8x128xf32> to vector<8x32xf32>
    %cst_23 = arith.constant dense<0.000000e+00> : vector<8x32xf32>
    %67 = tpu.matmul %65, %66, %cst_23 {dimension_numbers = #tpu.dot_dimension_numbers<[1], [0], [0], [1], [0, 0, 1, 1], [], []>} : vector<8x8xf32>, vector<8x32xf32>, vector<8x32xf32> -> vector<8x32xf32>
    %68 = tpu.concatenate %22, %37, %52, %67 in 1 : vector<8x32xf32>, vector<8x32xf32>, vector<8x32xf32>, vector<8x32xf32> -> vector<8x128xf32>
    %c0_24 = arith.constant 0 : index
    %c0_25 = arith.constant 0 : index
    %c0_26 = arith.constant 0 : index
    %69 = vector.load %arg4[%c0_24, %c0_25, %c0_26] : memref<1x8x128xf32, #tpu.memory_space<vmem>>, vector<1x8x128xf32>
    %70 = vector.shape_cast %69 : vector<1x8x128xf32> to vector<8x128xf32>
    %71 = vector.shape_cast %68 : vector<8x128xf32> to vector<1x8x128xf32>
    tpu.vector_store %arg4[%c0_24, %c0_25, %c0_26], %71 {strides = array<i32>} : memref<1x8x128xf32, #tpu.memory_space<vmem>>, vector<1x8x128xf32>,
    return
  }
  func.func @transform_0(%arg0: i32) -> (i32, i32, i32) {
    %c0_i32 = arith.constant 0 : i32
    %c0_i32_0 = arith.constant 0 : i32
    %c0_i32_1 = arith.constant 0 : i32
    return %arg0, %c0_i32, %c0_i32_0 : i32, i32, i32
  }
  func.func @transform_1(%arg0: i32) -> (i32, i32, i32) {
    %c0_i32 = arith.constant 0 : i32
    %c0_i32_0 = arith.constant 0 : i32
    %c0_i32_1 = arith.constant 0 : i32
    return %arg0, %c0_i32, %c0_i32_0 : i32, i32, i32
  }
  func.func @transform_2(%arg0: i32) -> (i32, i32, i32) {
    %c0_i32 = arith.constant 0 : i32
    %c0_i32_0 = arith.constant 0 : i32
    %c0_i32_1 = arith.constant 0 : i32
    return %arg0, %c0_i32, %c0_i32_0 : i32, i32, i32
  }
  func.func @transform_3(%arg0: i32) -> (i32, i32, i32) {
    %c0_i32 = arith.constant 0 : i32
    %c0_i32_0 = arith.constant 0 : i32
    %c0_i32_1 = arith.constant 0 : i32
    return %arg0, %c0_i32, %c0_i32_0 : i32, i32, i32
  }
}

module attributes {stable_mosaic.version = 11 : i64} {
  func.func @_qkv_kernel(%arg0: i32, %arg1: i32, %arg2: memref<1x8x128xf32, #tpu.memory_space<vmem>>, %arg3: memref<8x128xf32, #tpu.memory_space<vmem>>, %arg4: memref<128x128xf32, #tpu.memory_space<vmem>>, %arg5: memref<128x128xf32, #tpu.memory_space<vmem>>, %arg6: memref<128x128xf32, #tpu.memory_space<vmem>>, %arg7: memref<1x128xf32, #tpu.memory_space<vmem>>, %arg8: memref<1x128xf32, #tpu.memory_space<vmem>>, %arg9: memref<1x128xf32, #tpu.memory_space<vmem>>, %arg10: memref<1x8x128xf32, #tpu.memory_space<vmem>>, %arg11: memref<1x8x128xf32, #tpu.memory_space<vmem>>, %arg12: memref<1x8x128xf32, #tpu.memory_space<vmem>>) attributes {dimension_semantics = [#tpu.dimension_semantics<parallel>, #tpu.dimension_semantics<parallel>], iteration_bounds = array<i64: 1, 2>, scalar_prefetch = 0 : i64, scratch_operands = 0 : i64, tpu.core_type = #tpu.core_type<tc>, window_params = [{transform_indices = @transform_0, window_bounds = array<i64: 1, 8, 128>}, {transform_indices = @transform_1, window_bounds = array<i64: 8, 128>}, {pipeline_mode = #tpu.pipeline_mode<synchronous>, transform_indices = @transform_2, window_bounds = array<i64: 128, 128>}, {pipeline_mode = #tpu.pipeline_mode<synchronous>, transform_indices = @transform_3, window_bounds = array<i64: 128, 128>}, {pipeline_mode = #tpu.pipeline_mode<synchronous>, transform_indices = @transform_4, window_bounds = array<i64: 128, 128>}, {pipeline_mode = #tpu.pipeline_mode<synchronous>, transform_indices = @transform_5, window_bounds = array<i64: 1, 128>}, {pipeline_mode = #tpu.pipeline_mode<synchronous>, transform_indices = @transform_6, window_bounds = array<i64: 1, 128>}, {pipeline_mode = #tpu.pipeline_mode<synchronous>, transform_indices = @transform_7, window_bounds = array<i64: 1, 128>}, {transform_indices = @transform_8, window_bounds = array<i64: 1, 8, 128>}, {transform_indices = @transform_9, window_bounds = array<i64: 1, 8, 128>}, {transform_indices = @transform_10, window_bounds = array<i64: 1, 8, 128>}]} {
    %c0 = arith.constant 0 : index
    %c0_0 = arith.constant 0 : index
    %c0_1 = arith.constant 0 : index
    %0 = vector.load %arg2[%c0, %c0_0, %c0_1] : memref<1x8x128xf32, #tpu.memory_space<vmem>>, vector<1x8x128xf32>
    %1 = vector.shape_cast %0 : vector<1x8x128xf32> to vector<8x128xf32>
    %c0_2 = arith.constant 0 : index
    %c0_3 = arith.constant 0 : index
    %2 = vector.load %arg3[%c0_2, %c0_3] : memref<8x128xf32, #tpu.memory_space<vmem>>, vector<8x128xf32>
    %3 = arith.addf %1, %2 : vector<8x128xf32>
    %c0_4 = arith.constant 0 : index
    %c0_5 = arith.constant 0 : index
    %4 = vector.load %arg4[%c0_4, %c0_5] : memref<128x128xf32, #tpu.memory_space<vmem>>, vector<128x128xf32>
    %cst = arith.constant dense<0.000000e+00> : vector<8x128xf32>
    %5 = tpu.matmul %3, %4, %cst {dimension_numbers = #tpu.dot_dimension_numbers<[1], [0], [0], [1], [0, 0, 1, 1], [], []>} : vector<8x128xf32>, vector<128x128xf32>, vector<8x128xf32> -> vector<8x128xf32>
    %c0_6 = arith.constant 0 : index
    %c0_7 = arith.constant 0 : index
    %6 = vector.load %arg7[%c0_6, %c0_7] : memref<1x128xf32, #tpu.memory_space<vmem>>, vector<1x128xf32>
    %7 = vector.broadcast %6 : vector<1x128xf32> to vector<8x128xf32>
    %8 = arith.addf %5, %7 : vector<8x128xf32>
    %c0_8 = arith.constant 0 : index
    %c0_9 = arith.constant 0 : index
    %c0_10 = arith.constant 0 : index
    %9 = vector.load %arg10[%c0_8, %c0_9, %c0_10] : memref<1x8x128xf32, #tpu.memory_space<vmem>>, vector<1x8x128xf32>
    %10 = vector.shape_cast %9 : vector<1x8x128xf32> to vector<8x128xf32>
    %11 = vector.shape_cast %8 : vector<8x128xf32> to vector<1x8x128xf32>
    tpu.vector_store %arg10[%c0_8, %c0_9, %c0_10], %11 {strides = array<i32>} : memref<1x8x128xf32, #tpu.memory_space<vmem>>, vector<1x8x128xf32>,
    %c0_11 = arith.constant 0 : index
    %c0_12 = arith.constant 0 : index
    %12 = vector.load %arg5[%c0_11, %c0_12] : memref<128x128xf32, #tpu.memory_space<vmem>>, vector<128x128xf32>
    %cst_13 = arith.constant dense<0.000000e+00> : vector<8x128xf32>
    %13 = tpu.matmul %3, %12, %cst_13 {dimension_numbers = #tpu.dot_dimension_numbers<[1], [0], [0], [1], [0, 0, 1, 1], [], []>} : vector<8x128xf32>, vector<128x128xf32>, vector<8x128xf32> -> vector<8x128xf32>
    %c0_14 = arith.constant 0 : index
    %c0_15 = arith.constant 0 : index
    %14 = vector.load %arg8[%c0_14, %c0_15] : memref<1x128xf32, #tpu.memory_space<vmem>>, vector<1x128xf32>
    %15 = vector.broadcast %14 : vector<1x128xf32> to vector<8x128xf32>
    %16 = arith.addf %13, %15 : vector<8x128xf32>
    %c0_16 = arith.constant 0 : index
    %c0_17 = arith.constant 0 : index
    %c0_18 = arith.constant 0 : index
    %17 = vector.load %arg11[%c0_16, %c0_17, %c0_18] : memref<1x8x128xf32, #tpu.memory_space<vmem>>, vector<1x8x128xf32>
    %18 = vector.shape_cast %17 : vector<1x8x128xf32> to vector<8x128xf32>
    %19 = vector.shape_cast %16 : vector<8x128xf32> to vector<1x8x128xf32>
    tpu.vector_store %arg11[%c0_16, %c0_17, %c0_18], %19 {strides = array<i32>} : memref<1x8x128xf32, #tpu.memory_space<vmem>>, vector<1x8x128xf32>,
    %c0_19 = arith.constant 0 : index
    %c0_20 = arith.constant 0 : index
    %20 = vector.load %arg6[%c0_19, %c0_20] : memref<128x128xf32, #tpu.memory_space<vmem>>, vector<128x128xf32>
    %cst_21 = arith.constant dense<0.000000e+00> : vector<8x128xf32>
    %21 = tpu.matmul %3, %20, %cst_21 {dimension_numbers = #tpu.dot_dimension_numbers<[1], [0], [0], [1], [0, 0, 1, 1], [], []>} : vector<8x128xf32>, vector<128x128xf32>, vector<8x128xf32> -> vector<8x128xf32>
    %c0_22 = arith.constant 0 : index
    %c0_23 = arith.constant 0 : index
    %22 = vector.load %arg9[%c0_22, %c0_23] : memref<1x128xf32, #tpu.memory_space<vmem>>, vector<1x128xf32>
    %23 = vector.broadcast %22 : vector<1x128xf32> to vector<8x128xf32>
    %24 = arith.addf %21, %23 : vector<8x128xf32>
    %c0_24 = arith.constant 0 : index
    %c0_25 = arith.constant 0 : index
    %c0_26 = arith.constant 0 : index
    %25 = vector.load %arg12[%c0_24, %c0_25, %c0_26] : memref<1x8x128xf32, #tpu.memory_space<vmem>>, vector<1x8x128xf32>
    %26 = vector.shape_cast %25 : vector<1x8x128xf32> to vector<8x128xf32>
    %27 = vector.shape_cast %24 : vector<8x128xf32> to vector<1x8x128xf32>
    tpu.vector_store %arg12[%c0_24, %c0_25, %c0_26], %27 {strides = array<i32>} : memref<1x8x128xf32, #tpu.memory_space<vmem>>, vector<1x8x128xf32>,
    return
  }
  func.func @transform_0(%arg0: i32, %arg1: i32) -> (i32, i32, i32) {
    %c0_i32 = arith.constant 0 : i32
    %c0_i32_0 = arith.constant 0 : i32
    return %arg1, %arg0, %c0_i32 : i32, i32, i32
  }
  func.func @transform_1(%arg0: i32, %arg1: i32) -> (i32, i32) {
    %c0_i32 = arith.constant 0 : i32
    %c0_i32_0 = arith.constant 0 : i32
    return %arg0, %c0_i32 : i32, i32
  }
  func.func @transform_2(%arg0: i32, %arg1: i32) -> (i32, i32) {
    %c0_i32 = arith.constant 0 : i32
    %c0_i32_0 = arith.constant 0 : i32
    %c0_i32_1 = arith.constant 0 : i32
    return %c0_i32, %c0_i32_0 : i32, i32
  }
  func.func @transform_3(%arg0: i32, %arg1: i32) -> (i32, i32) {
    %c0_i32 = arith.constant 0 : i32
    %c0_i32_0 = arith.constant 0 : i32
    %c0_i32_1 = arith.constant 0 : i32
    return %c0_i32, %c0_i32_0 : i32, i32
  }
  func.func @transform_4(%arg0: i32, %arg1: i32) -> (i32, i32) {
    %c0_i32 = arith.constant 0 : i32
    %c0_i32_0 = arith.constant 0 : i32
    %c0_i32_1 = arith.constant 0 : i32
    return %c0_i32, %c0_i32_0 : i32, i32
  }
  func.func @transform_5(%arg0: i32, %arg1: i32) -> (i32, i32) {
    %c0_i32 = arith.constant 0 : i32
    %c0_i32_0 = arith.constant 0 : i32
    %c0_i32_1 = arith.constant 0 : i32
    return %c0_i32, %c0_i32_0 : i32, i32
  }
  func.func @transform_6(%arg0: i32, %arg1: i32) -> (i32, i32) {
    %c0_i32 = arith.constant 0 : i32
    %c0_i32_0 = arith.constant 0 : i32
    %c0_i32_1 = arith.constant 0 : i32
    return %c0_i32, %c0_i32_0 : i32, i32
  }
  func.func @transform_7(%arg0: i32, %arg1: i32) -> (i32, i32) {
    %c0_i32 = arith.constant 0 : i32
    %c0_i32_0 = arith.constant 0 : i32
    %c0_i32_1 = arith.constant 0 : i32
    return %c0_i32, %c0_i32_0 : i32, i32
  }
  func.func @transform_8(%arg0: i32, %arg1: i32) -> (i32, i32, i32) {
    %c0_i32 = arith.constant 0 : i32
    %c0_i32_0 = arith.constant 0 : i32
    return %arg1, %arg0, %c0_i32 : i32, i32, i32
  }
  func.func @transform_9(%arg0: i32, %arg1: i32) -> (i32, i32, i32) {
    %c0_i32 = arith.constant 0 : i32
    %c0_i32_0 = arith.constant 0 : i32
    return %arg1, %arg0, %c0_i32 : i32, i32, i32
  }
  func.func @transform_10(%arg0: i32, %arg1: i32) -> (i32, i32, i32) {
    %c0_i32 = arith.constant 0 : i32
    %c0_i32_0 = arith.constant 0 : i32
    return %arg1, %arg0, %c0_i32 : i32, i32, i32
  }
}

module attributes {stable_mosaic.version = 11 : i64} {
  func.func @_attn_out_ln_kernel(%arg0: i32, %arg1: i32, %arg2: memref<1x8x128xf32, #tpu.memory_space<vmem>>, %arg3: memref<1x8x128xf32, #tpu.memory_space<vmem>>, %arg4: memref<8x128xf32, #tpu.memory_space<vmem>>, %arg5: memref<128x128xf32, #tpu.memory_space<vmem>>, %arg6: memref<1x128xf32, #tpu.memory_space<vmem>>, %arg7: memref<1x128xf32, #tpu.memory_space<vmem>>, %arg8: memref<1x128xf32, #tpu.memory_space<vmem>>, %arg9: memref<1x8x128xf32, #tpu.memory_space<vmem>>) attributes {dimension_semantics = [#tpu.dimension_semantics<parallel>, #tpu.dimension_semantics<parallel>], iteration_bounds = array<i64: 1, 2>, scalar_prefetch = 0 : i64, scratch_operands = 0 : i64, tpu.core_type = #tpu.core_type<tc>, window_params = [{transform_indices = @transform_0, window_bounds = array<i64: 1, 8, 128>}, {transform_indices = @transform_1, window_bounds = array<i64: 1, 8, 128>}, {transform_indices = @transform_2, window_bounds = array<i64: 8, 128>}, {pipeline_mode = #tpu.pipeline_mode<synchronous>, transform_indices = @transform_3, window_bounds = array<i64: 128, 128>}, {pipeline_mode = #tpu.pipeline_mode<synchronous>, transform_indices = @transform_4, window_bounds = array<i64: 1, 128>}, {pipeline_mode = #tpu.pipeline_mode<synchronous>, transform_indices = @transform_5, window_bounds = array<i64: 1, 128>}, {pipeline_mode = #tpu.pipeline_mode<synchronous>, transform_indices = @transform_6, window_bounds = array<i64: 1, 128>}, {transform_indices = @transform_7, window_bounds = array<i64: 1, 8, 128>}]} {
    %c0 = arith.constant 0 : index
    %c0_0 = arith.constant 0 : index
    %c0_1 = arith.constant 0 : index
    %0 = vector.load %arg2[%c0, %c0_0, %c0_1] : memref<1x8x128xf32, #tpu.memory_space<vmem>>, vector<1x8x128xf32>
    %1 = vector.shape_cast %0 : vector<1x8x128xf32> to vector<8x128xf32>
    %c0_2 = arith.constant 0 : index
    %c0_3 = arith.constant 0 : index
    %2 = vector.load %arg5[%c0_2, %c0_3] : memref<128x128xf32, #tpu.memory_space<vmem>>, vector<128x128xf32>
    %cst = arith.constant dense<0.000000e+00> : vector<8x128xf32>
    %3 = tpu.matmul %1, %2, %cst {dimension_numbers = #tpu.dot_dimension_numbers<[1], [0], [0], [1], [0, 0, 1, 1], [], []>} : vector<8x128xf32>, vector<128x128xf32>, vector<8x128xf32> -> vector<8x128xf32>
    %c0_4 = arith.constant 0 : index
    %c0_5 = arith.constant 0 : index
    %4 = vector.load %arg6[%c0_4, %c0_5] : memref<1x128xf32, #tpu.memory_space<vmem>>, vector<1x128xf32>
    %5 = vector.broadcast %4 : vector<1x128xf32> to vector<8x128xf32>
    %6 = arith.addf %3, %5 : vector<8x128xf32>
    %c0_6 = arith.constant 0 : index
    %c0_7 = arith.constant 0 : index
    %c0_8 = arith.constant 0 : index
    %7 = vector.load %arg3[%c0_6, %c0_7, %c0_8] : memref<1x8x128xf32, #tpu.memory_space<vmem>>, vector<1x8x128xf32>
    %8 = vector.shape_cast %7 : vector<1x8x128xf32> to vector<8x128xf32>
    %c0_9 = arith.constant 0 : index
    %c0_10 = arith.constant 0 : index
    %9 = vector.load %arg4[%c0_9, %c0_10] : memref<8x128xf32, #tpu.memory_space<vmem>>, vector<8x128xf32>
    %10 = arith.addf %8, %9 : vector<8x128xf32>
    %11 = arith.addf %10, %6 : vector<8x128xf32>
    %cst_11 = arith.constant dense<0.000000e+00> : vector<8xf32>
    %12 = vector.multi_reduction <add>, %11, %cst_11 [1] : vector<8x128xf32> to vector<8xf32>
    %13 = vector.shape_cast %12 : vector<8xf32> to vector<8x1xf32>
    %cst_12 = arith.constant 1.280000e+02 : f32
    %14 = vector.broadcast %cst_12 : f32 to vector<8x1xf32>
    %15 = arith.divf %13, %14 : vector<8x1xf32>
    %16 = vector.broadcast %15 : vector<8x1xf32> to vector<8x128xf32>
    %17 = arith.subf %11, %16 : vector<8x128xf32>
    %18 = arith.mulf %17, %17 : vector<8x128xf32>
    %cst_13 = arith.constant dense<0.000000e+00> : vector<8xf32>
    %19 = vector.multi_reduction <add>, %18, %cst_13 [1] : vector<8x128xf32> to vector<8xf32>
    %20 = vector.shape_cast %19 : vector<8xf32> to vector<8x1xf32>
    %cst_14 = arith.constant 1.280000e+02 : f32
    %21 = vector.broadcast %cst_14 : f32 to vector<8x1xf32>
    %22 = arith.divf %20, %21 : vector<8x1xf32>
    %cst_15 = arith.constant 9.99999974E-6 : f32
    %23 = vector.broadcast %cst_15 : f32 to vector<8x1xf32>
    %24 = arith.addf %22, %23 : vector<8x1xf32>
    %25 = math.rsqrt %24 : vector<8x1xf32>
    %26 = vector.broadcast %25 : vector<8x1xf32> to vector<8x128xf32>
    %27 = arith.mulf %17, %26 : vector<8x128xf32>
    %c0_16 = arith.constant 0 : index
    %c0_17 = arith.constant 0 : index
    %28 = vector.load %arg7[%c0_16, %c0_17] : memref<1x128xf32, #tpu.memory_space<vmem>>, vector<1x128xf32>
    %29 = vector.broadcast %28 : vector<1x128xf32> to vector<8x128xf32>
    %30 = arith.mulf %27, %29 : vector<8x128xf32>
    %c0_18 = arith.constant 0 : index
    %c0_19 = arith.constant 0 : index
    %31 = vector.load %arg8[%c0_18, %c0_19] : memref<1x128xf32, #tpu.memory_space<vmem>>, vector<1x128xf32>
    %32 = vector.broadcast %31 : vector<1x128xf32> to vector<8x128xf32>
    %33 = arith.addf %30, %32 : vector<8x128xf32>
    %c0_20 = arith.constant 0 : index
    %c0_21 = arith.constant 0 : index
    %c0_22 = arith.constant 0 : index
    %34 = vector.load %arg9[%c0_20, %c0_21, %c0_22] : memref<1x8x128xf32, #tpu.memory_space<vmem>>, vector<1x8x128xf32>
    %35 = vector.shape_cast %34 : vector<1x8x128xf32> to vector<8x128xf32>
    %36 = vector.shape_cast %33 : vector<8x128xf32> to vector<1x8x128xf32>
    tpu.vector_store %arg9[%c0_20, %c0_21, %c0_22], %36 {strides = array<i32>} : memref<1x8x128xf32, #tpu.memory_space<vmem>>, vector<1x8x128xf32>,
    return
  }
  func.func @transform_0(%arg0: i32, %arg1: i32) -> (i32, i32, i32) {
    %c0_i32 = arith.constant 0 : i32
    %c0_i32_0 = arith.constant 0 : i32
    return %arg1, %arg0, %c0_i32 : i32, i32, i32
  }
  func.func @transform_1(%arg0: i32, %arg1: i32) -> (i32, i32, i32) {
    %c0_i32 = arith.constant 0 : i32
    %c0_i32_0 = arith.constant 0 : i32
    return %arg1, %arg0, %c0_i32 : i32, i32, i32
  }
  func.func @transform_2(%arg0: i32, %arg1: i32) -> (i32, i32) {
    %c0_i32 = arith.constant 0 : i32
    %c0_i32_0 = arith.constant 0 : i32
    return %arg0, %c0_i32 : i32, i32
  }
  func.func @transform_3(%arg0: i32, %arg1: i32) -> (i32, i32) {
    %c0_i32 = arith.constant 0 : i32
    %c0_i32_0 = arith.constant 0 : i32
    %c0_i32_1 = arith.constant 0 : i32
    return %c0_i32, %c0_i32_0 : i32, i32
  }
  func.func @transform_4(%arg0: i32, %arg1: i32) -> (i32, i32) {
    %c0_i32 = arith.constant 0 : i32
    %c0_i32_0 = arith.constant 0 : i32
    %c0_i32_1 = arith.constant 0 : i32
    return %c0_i32, %c0_i32_0 : i32, i32
  }
  func.func @transform_5(%arg0: i32, %arg1: i32) -> (i32, i32) {
    %c0_i32 = arith.constant 0 : i32
    %c0_i32_0 = arith.constant 0 : i32
    %c0_i32_1 = arith.constant 0 : i32
    return %c0_i32, %c0_i32_0 : i32, i32
  }
  func.func @transform_6(%arg0: i32, %arg1: i32) -> (i32, i32) {
    %c0_i32 = arith.constant 0 : i32
    %c0_i32_0 = arith.constant 0 : i32
    %c0_i32_1 = arith.constant 0 : i32
    return %c0_i32, %c0_i32_0 : i32, i32
  }
  func.func @transform_7(%arg0: i32, %arg1: i32) -> (i32, i32, i32) {
    %c0_i32 = arith.constant 0 : i32
    %c0_i32_0 = arith.constant 0 : i32
    return %arg1, %arg0, %c0_i32 : i32, i32, i32
  }
}

module attributes {stable_mosaic.version = 11 : i64} {
  func.func @_ffn_ln_kernel(%arg0: i32, %arg1: i32, %arg2: i32, %arg3: memref<1x8x128xf32, #tpu.memory_space<vmem>>, %arg4: memref<128x128xf32, #tpu.memory_space<vmem>>, %arg5: memref<1x128xf32, #tpu.memory_space<vmem>>, %arg6: memref<128x128xf32, #tpu.memory_space<vmem>>, %arg7: memref<1x128xf32, #tpu.memory_space<vmem>>, %arg8: memref<1x128xf32, #tpu.memory_space<vmem>>, %arg9: memref<1x128xf32, #tpu.memory_space<vmem>>, %arg10: memref<1x8x128xf32, #tpu.memory_space<vmem>>, %arg11: memref<8x128xf32, #tpu.memory_space<vmem>>) attributes {dimension_semantics = [#tpu.dimension_semantics<parallel>, #tpu.dimension_semantics<parallel>, #tpu.dimension_semantics<arbitrary>], iteration_bounds = array<i64: 1, 2, 2>, scalar_prefetch = 0 : i64, scratch_operands = 1 : i64, tpu.core_type = #tpu.core_type<tc>, window_params = [{transform_indices = @transform_0, window_bounds = array<i64: 1, 8, 128>}, {transform_indices = @transform_1, window_bounds = array<i64: 128, 128>}, {transform_indices = @transform_2, window_bounds = array<i64: 1, 128>}, {transform_indices = @transform_3, window_bounds = array<i64: 128, 128>}, {pipeline_mode = #tpu.pipeline_mode<synchronous>, transform_indices = @transform_4, window_bounds = array<i64: 1, 128>}, {pipeline_mode = #tpu.pipeline_mode<synchronous>, transform_indices = @transform_5, window_bounds = array<i64: 1, 128>}, {pipeline_mode = #tpu.pipeline_mode<synchronous>, transform_indices = @transform_6, window_bounds = array<i64: 1, 128>}, {transform_indices = @transform_7, window_bounds = array<i64: 1, 8, 128>}]} {
    %c0_i32 = arith.constant 0 : i32
    %0 = arith.cmpi eq, %arg2, %c0_i32 : i32
    %1 = arith.extui %0 : i1 to i32
    %c0_i32_0 = arith.constant 0 : i32
    %2 = arith.cmpi ne, %1, %c0_i32_0 : i32
    scf.if %2 {
      %cst_16 = arith.constant 0.000000e+00 : f32
      %20 = vector.broadcast %cst_16 : f32 to vector<8x128xf32>
      %c0_17 = arith.constant 0 : index
      %c0_18 = arith.constant 0 : index
      %21 = vector.load %arg11[%c0_17, %c0_18] : memref<8x128xf32, #tpu.memory_space<vmem>>, vector<8x128xf32>
      tpu.vector_store %arg11[%c0_17, %c0_18], %20 {strides = array<i32>} : memref<8x128xf32, #tpu.memory_space<vmem>>, vector<8x128xf32>,
    } else {
    }
    %c0 = arith.constant 0 : index
    %c0_1 = arith.constant 0 : index
    %c0_2 = arith.constant 0 : index
    %3 = vector.load %arg3[%c0, %c0_1, %c0_2] : memref<1x8x128xf32, #tpu.memory_space<vmem>>, vector<1x8x128xf32>
    %4 = vector.shape_cast %3 : vector<1x8x128xf32> to vector<8x128xf32>
    %c0_3 = arith.constant 0 : index
    %c0_4 = arith.constant 0 : index
    %5 = vector.load %arg4[%c0_3, %c0_4] : memref<128x128xf32, #tpu.memory_space<vmem>>, vector<128x128xf32>
    %cst = arith.constant dense<0.000000e+00> : vector<8x128xf32>
    %6 = tpu.matmul %4, %5, %cst {dimension_numbers = #tpu.dot_dimension_numbers<[1], [0], [0], [1], [0, 0, 1, 1], [], []>} : vector<8x128xf32>, vector<128x128xf32>, vector<8x128xf32> -> vector<8x128xf32>
    %c0_5 = arith.constant 0 : index
    %c0_6 = arith.constant 0 : index
    %7 = vector.load %arg5[%c0_5, %c0_6] : memref<1x128xf32, #tpu.memory_space<vmem>>, vector<1x128xf32>
    %8 = vector.broadcast %7 : vector<1x128xf32> to vector<8x128xf32>
    %9 = arith.addf %6, %8 : vector<8x128xf32>
    %cst_7 = arith.constant 0.000000e+00 : f32
    %10 = vector.broadcast %cst_7 : f32 to vector<8x128xf32>
    %11 = arith.maximumf %9, %10 : vector<8x128xf32>
    %c0_8 = arith.constant 0 : index
    %c0_9 = arith.constant 0 : index
    %12 = vector.load %arg11[%c0_8, %c0_9] : memref<8x128xf32, #tpu.memory_space<vmem>>, vector<8x128xf32>
    %c0_10 = arith.constant 0 : index
    %c0_11 = arith.constant 0 : index
    %13 = vector.load %arg6[%c0_10, %c0_11] : memref<128x128xf32, #tpu.memory_space<vmem>>, vector<128x128xf32>
    %cst_12 = arith.constant dense<0.000000e+00> : vector<8x128xf32>
    %14 = tpu.matmul %11, %13, %cst_12 {dimension_numbers = #tpu.dot_dimension_numbers<[1], [0], [0], [1], [0, 0, 1, 1], [], []>} : vector<8x128xf32>, vector<128x128xf32>, vector<8x128xf32> -> vector<8x128xf32>
    %15 = arith.addf %12, %14 : vector<8x128xf32>
    %c0_13 = arith.constant 0 : index
    %c0_14 = arith.constant 0 : index
    %16 = vector.load %arg11[%c0_13, %c0_14] : memref<8x128xf32, #tpu.memory_space<vmem>>, vector<8x128xf32>
    tpu.vector_store %arg11[%c0_13, %c0_14], %15 {strides = array<i32>} : memref<8x128xf32, #tpu.memory_space<vmem>>, vector<8x128xf32>,
    %c1_i32 = arith.constant 1 : i32
    %17 = arith.cmpi eq, %arg2, %c1_i32 : i32
    %18 = arith.extui %17 : i1 to i32
    %c0_i32_15 = arith.constant 0 : i32
    %19 = arith.cmpi ne, %18, %c0_i32_15 : i32
    scf.if %19 {
      %c0_16 = arith.constant 0 : index
      %c0_17 = arith.constant 0 : index
      %20 = vector.load %arg11[%c0_16, %c0_17] : memref<8x128xf32, #tpu.memory_space<vmem>>, vector<8x128xf32>
      %c0_18 = arith.constant 0 : index
      %c0_19 = arith.constant 0 : index
      %21 = vector.load %arg7[%c0_18, %c0_19] : memref<1x128xf32, #tpu.memory_space<vmem>>, vector<1x128xf32>
      %22 = vector.broadcast %21 : vector<1x128xf32> to vector<8x128xf32>
      %23 = arith.addf %20, %22 : vector<8x128xf32>
      %c0_20 = arith.constant 0 : index
      %c0_21 = arith.constant 0 : index
      %c0_22 = arith.constant 0 : index
      %24 = vector.load %arg3[%c0_20, %c0_21, %c0_22] : memref<1x8x128xf32, #tpu.memory_space<vmem>>, vector<1x8x128xf32>
      %25 = vector.shape_cast %24 : vector<1x8x128xf32> to vector<8x128xf32>
      %26 = arith.addf %23, %25 : vector<8x128xf32>
      %cst_23 = arith.constant dense<0.000000e+00> : vector<8xf32>
      %27 = vector.multi_reduction <add>, %26, %cst_23 [1] : vector<8x128xf32> to vector<8xf32>
      %28 = vector.shape_cast %27 : vector<8xf32> to vector<8x1xf32>
      %cst_24 = arith.constant 1.280000e+02 : f32
      %29 = vector.broadcast %cst_24 : f32 to vector<8x1xf32>
      %30 = arith.divf %28, %29 : vector<8x1xf32>
      %31 = vector.broadcast %30 : vector<8x1xf32> to vector<8x128xf32>
      %32 = arith.subf %26, %31 : vector<8x128xf32>
      %33 = arith.mulf %32, %32 : vector<8x128xf32>
      %cst_25 = arith.constant dense<0.000000e+00> : vector<8xf32>
      %34 = vector.multi_reduction <add>, %33, %cst_25 [1] : vector<8x128xf32> to vector<8xf32>
      %35 = vector.shape_cast %34 : vector<8xf32> to vector<8x1xf32>
      %cst_26 = arith.constant 1.280000e+02 : f32
      %36 = vector.broadcast %cst_26 : f32 to vector<8x1xf32>
      %37 = arith.divf %35, %36 : vector<8x1xf32>
      %cst_27 = arith.constant 9.99999974E-6 : f32
      %38 = vector.broadcast %cst_27 : f32 to vector<8x1xf32>
      %39 = arith.addf %37, %38 : vector<8x1xf32>
      %40 = math.rsqrt %39 : vector<8x1xf32>
      %41 = vector.broadcast %40 : vector<8x1xf32> to vector<8x128xf32>
      %42 = arith.mulf %32, %41 : vector<8x128xf32>
      %c0_28 = arith.constant 0 : index
      %c0_29 = arith.constant 0 : index
      %43 = vector.load %arg8[%c0_28, %c0_29] : memref<1x128xf32, #tpu.memory_space<vmem>>, vector<1x128xf32>
      %44 = vector.broadcast %43 : vector<1x128xf32> to vector<8x128xf32>
      %45 = arith.mulf %42, %44 : vector<8x128xf32>
      %c0_30 = arith.constant 0 : index
      %c0_31 = arith.constant 0 : index
      %46 = vector.load %arg9[%c0_30, %c0_31] : memref<1x128xf32, #tpu.memory_space<vmem>>, vector<1x128xf32>
      %47 = vector.broadcast %46 : vector<1x128xf32> to vector<8x128xf32>
      %48 = arith.addf %45, %47 : vector<8x128xf32>
      %c0_32 = arith.constant 0 : index
      %c0_33 = arith.constant 0 : index
      %c0_34 = arith.constant 0 : index
      %49 = vector.load %arg10[%c0_32, %c0_33, %c0_34] : memref<1x8x128xf32, #tpu.memory_space<vmem>>, vector<1x8x128xf32>
      %50 = vector.shape_cast %49 : vector<1x8x128xf32> to vector<8x128xf32>
      %51 = vector.shape_cast %48 : vector<8x128xf32> to vector<1x8x128xf32>
      tpu.vector_store %arg10[%c0_32, %c0_33, %c0_34], %51 {strides = array<i32>} : memref<1x8x128xf32, #tpu.memory_space<vmem>>, vector<1x8x128xf32>,
    } else {
    }
    return
  }
  func.func @transform_0(%arg0: i32, %arg1: i32, %arg2: i32) -> (i32, i32, i32) {
    %c0_i32 = arith.constant 0 : i32
    %c0_i32_0 = arith.constant 0 : i32
    return %arg1, %arg0, %c0_i32 : i32, i32, i32
  }
  func.func @transform_1(%arg0: i32, %arg1: i32, %arg2: i32) -> (i32, i32) {
    %c0_i32 = arith.constant 0 : i32
    %c0_i32_0 = arith.constant 0 : i32
    return %c0_i32, %arg2 : i32, i32
  }
  func.func @transform_2(%arg0: i32, %arg1: i32, %arg2: i32) -> (i32, i32) {
    %c0_i32 = arith.constant 0 : i32
    %c0_i32_0 = arith.constant 0 : i32
    return %c0_i32, %arg2 : i32, i32
  }
  func.func @transform_3(%arg0: i32, %arg1: i32, %arg2: i32) -> (i32, i32) {
    %c0_i32 = arith.constant 0 : i32
    %c0_i32_0 = arith.constant 0 : i32
    return %arg2, %c0_i32 : i32, i32
  }
  func.func @transform_4(%arg0: i32, %arg1: i32, %arg2: i32) -> (i32, i32) {
    %c0_i32 = arith.constant 0 : i32
    %c0_i32_0 = arith.constant 0 : i32
    %c0_i32_1 = arith.constant 0 : i32
    return %c0_i32, %c0_i32_0 : i32, i32
  }
  func.func @transform_5(%arg0: i32, %arg1: i32, %arg2: i32) -> (i32, i32) {
    %c0_i32 = arith.constant 0 : i32
    %c0_i32_0 = arith.constant 0 : i32
    %c0_i32_1 = arith.constant 0 : i32
    return %c0_i32, %c0_i32_0 : i32, i32
  }
  func.func @transform_6(%arg0: i32, %arg1: i32, %arg2: i32) -> (i32, i32) {
    %c0_i32 = arith.constant 0 : i32
    %c0_i32_0 = arith.constant 0 : i32
    %c0_i32_1 = arith.constant 0 : i32
    return %c0_i32, %c0_i32_0 : i32, i32
  }
  func.func @transform_7(%arg0: i32, %arg1: i32, %arg2: i32) -> (i32, i32, i32) {
    %c0_i32 = arith.constant 0 : i32
    %c0_i32_0 = arith.constant 0 : i32
    return %arg1, %arg0, %c0_i32 : i32, i32, i32
  }
}

module attributes {stable_mosaic.version = 11 : i64} {
  func.func @_pool_classify_kernel(%arg0: i32, %arg1: memref<2x8x128xf32, #tpu.memory_space<vmem>>, %arg2: memref<1x128xf32, #tpu.memory_space<vmem>>, %arg3: memref<1x1xf32, #tpu.memory_space<vmem>>, %arg4: memref<2x1xf32, #tpu.memory_space<vmem>>, %arg5: memref<2x128xf32, #tpu.memory_space<vmem>>) attributes {dimension_semantics = [#tpu.dimension_semantics<arbitrary>], iteration_bounds = array<i64: 1>, scalar_prefetch = 0 : i64, scratch_operands = 1 : i64, tpu.core_type = #tpu.core_type<tc>, window_params = [{transform_indices = @transform_0, window_bounds = array<i64: 2, 8, 128>}, {pipeline_mode = #tpu.pipeline_mode<synchronous>, transform_indices = @transform_1, window_bounds = array<i64: 1, 128>}, {pipeline_mode = #tpu.pipeline_mode<synchronous>, transform_indices = @transform_2, window_bounds = array<i64: 1, 1>}, {pipeline_mode = #tpu.pipeline_mode<synchronous>, transform_indices = @transform_3, window_bounds = array<i64: 2, 1>}]} {
    %c0_i32 = arith.constant 0 : i32
    %0 = arith.cmpi eq, %arg0, %c0_i32 : i32
    %1 = arith.extui %0 : i1 to i32
    %c0_i32_0 = arith.constant 0 : i32
    %2 = arith.cmpi ne, %1, %c0_i32_0 : i32
    scf.if %2 {
      %cst_9 = arith.constant 0.000000e+00 : f32
      %11 = vector.broadcast %cst_9 : f32 to vector<2x128xf32>
      %c0_10 = arith.constant 0 : index
      %c0_11 = arith.constant 0 : index
      %12 = vector.load %arg5[%c0_10, %c0_11] : memref<2x128xf32, #tpu.memory_space<vmem>>, vector<2x128xf32>
      tpu.vector_store %arg5[%c0_10, %c0_11], %11 {strides = array<i32>} : memref<2x128xf32, #tpu.memory_space<vmem>>, vector<2x128xf32>,
    } else {
    }
    %c0 = arith.constant 0 : index
    %c0_1 = arith.constant 0 : index
    %3 = vector.load %arg5[%c0, %c0_1] : memref<2x128xf32, #tpu.memory_space<vmem>>, vector<2x128xf32>
    %c0_2 = arith.constant 0 : index
    %c0_3 = arith.constant 0 : index
    %c0_4 = arith.constant 0 : index
    %4 = vector.load %arg1[%c0_2, %c0_3, %c0_4] : memref<2x8x128xf32, #tpu.memory_space<vmem>>, vector<2x8x128xf32>
    %cst = arith.constant dense<0.000000e+00> : vector<2x128xf32>
    %5 = vector.multi_reduction <add>, %4, %cst [1] : vector<2x8x128xf32> to vector<2x128xf32>
    %6 = arith.addf %3, %5 : vector<2x128xf32>
    %c0_5 = arith.constant 0 : index
    %c0_6 = arith.constant 0 : index
    %7 = vector.load %arg5[%c0_5, %c0_6] : memref<2x128xf32, #tpu.memory_space<vmem>>, vector<2x128xf32>
    tpu.vector_store %arg5[%c0_5, %c0_6], %6 {strides = array<i32>} : memref<2x128xf32, #tpu.memory_space<vmem>>, vector<2x128xf32>,
    %c0_i32_7 = arith.constant 0 : i32
    %8 = arith.cmpi eq, %arg0, %c0_i32_7 : i32
    %9 = arith.extui %8 : i1 to i32
    %c0_i32_8 = arith.constant 0 : i32
    %10 = arith.cmpi ne, %9, %c0_i32_8 : i32
    scf.if %10 {
      %c0_9 = arith.constant 0 : index
      %c0_10 = arith.constant 0 : index
      %11 = vector.load %arg5[%c0_9, %c0_10] : memref<2x128xf32, #tpu.memory_space<vmem>>, vector<2x128xf32>
      %cst_11 = arith.constant 1.250000e-01 : f32
      %12 = vector.broadcast %cst_11 : f32 to vector<2x128xf32>
      %13 = arith.mulf %11, %12 : vector<2x128xf32>
      %c0_12 = arith.constant 0 : index
      %c0_13 = arith.constant 0 : index
      %14 = vector.load %arg2[%c0_12, %c0_13] : memref<1x128xf32, #tpu.memory_space<vmem>>, vector<1x128xf32>
      %15 = vector.broadcast %14 : vector<1x128xf32> to vector<2x128xf32>
      %16 = arith.mulf %13, %15 : vector<2x128xf32>
      %cst_14 = arith.constant dense<0.000000e+00> : vector<2xf32>
      %17 = vector.multi_reduction <add>, %16, %cst_14 [1] : vector<2x128xf32> to vector<2xf32>
      %18 = vector.shape_cast %17 : vector<2xf32> to vector<2x1xf32>
      %c0_15 = arith.constant 0 : index
      %c0_16 = arith.constant 0 : index
      %19 = vector.load %arg3[%c0_15, %c0_16] : memref<1x1xf32, #tpu.memory_space<vmem>>, vector<1x1xf32>
      %20 = vector.broadcast %19 : vector<1x1xf32> to vector<2x1xf32>
      %21 = arith.addf %18, %20 : vector<2x1xf32>
      %cst_17 = arith.constant 0.000000e+00 : f32
      %22 = vector.broadcast %cst_17 : f32 to vector<2x1xf32>
      %23 = arith.subf %22, %21 : vector<2x1xf32>
      %24 = math.exp %23 : vector<2x1xf32>
      %cst_18 = arith.constant 1.000000e+00 : f32
      %25 = vector.broadcast %cst_18 : f32 to vector<2x1xf32>
      %26 = arith.addf %25, %24 : vector<2x1xf32>
      %cst_19 = arith.constant 1.000000e+00 : f32
      %27 = vector.broadcast %cst_19 : f32 to vector<2x1xf32>
      %28 = arith.divf %27, %26 : vector<2x1xf32>
      %c0_20 = arith.constant 0 : index
      %c0_21 = arith.constant 0 : index
      %29 = vector.load %arg4[%c0_20, %c0_21] : memref<2x1xf32, #tpu.memory_space<vmem>>, vector<2x1xf32>
      tpu.vector_store %arg4[%c0_20, %c0_21], %28 {strides = array<i32>} : memref<2x1xf32, #tpu.memory_space<vmem>>, vector<2x1xf32>,
    } else {
    }
    return
  }
  func.func @transform_0(%arg0: i32) -> (i32, i32, i32) {
    %c0_i32 = arith.constant 0 : i32
    %c0_i32_0 = arith.constant 0 : i32
    %c0_i32_1 = arith.constant 0 : i32
    return %c0_i32, %arg0, %c0_i32_0 : i32, i32, i32
  }
  func.func @transform_1(%arg0: i32) -> (i32, i32) {
    %c0_i32 = arith.constant 0 : i32
    %c0_i32_0 = arith.constant 0 : i32
    %c0_i32_1 = arith.constant 0 : i32
    return %c0_i32, %c0_i32_0 : i32, i32
  }
  func.func @transform_2(%arg0: i32) -> (i32, i32) {
    %c0_i32 = arith.constant 0 : i32
    %c0_i32_0 = arith.constant 0 : i32
    %c0_i32_1 = arith.constant 0 : i32
    return %c0_i32, %c0_i32_0 : i32, i32
  }
  func.func @transform_3(%arg0: i32) -> (i32, i32) {
    %c0_i32 = arith.constant 0 : i32
    %c0_i32_0 = arith.constant 0 : i32
    %c0_i32_1 = arith.constant 0 : i32
    return %c0_i32, %c0_i32_0 : i32, i32
  }
}

</mosaic_0001>

<bundles_post_ra>
// kernel: transformer_forward.5
= control target key start
LH: loop header
LB: loop body
LE: loop exit
PB: predicated region body
PF: predicated region fallthrough
CT: control target
= control target key end

     0   :  { %s1249_s13 = smov 0   ;;  %s1251_s14 = smov 0   ;;  %s1484_s0 = inlined_call_operand.vmem [shape: f32[2,8,128], index: 0, kind: input, shape index: {}]   ;;  %s1485_s1 = inlined_call_operand.vmem [shape: f32[8,128], index: 1, kind: input, shape index: {}]   ;;  %s1486_s2 = inlined_call_operand.vmem [shape: f32[128,128], index: 2, kind: input, shape index: {}]   ;;  %s1487_s3 = inlined_call_operand.vmem [shape: f32[128,128], index: 3, kind: input, shape index: {}]   ;;  %s1488_s4 = inlined_call_operand.vmem [shape: f32[128,128], index: 4, kind: input, shape index: {}]   ;;  %s1489_s5 = inlined_call_operand.vmem [shape: f32[1,128], index: 5, kind: input, shape index: {}]   ;;  %s1490_s6 = inlined_call_operand.vmem [shape: f32[1,128], index: 6, kind: input, shape index: {}]   ;;  %s1491_s7 = inlined_call_operand.vmem [shape: f32[1,128], index: 7, kind: input, shape index: {}]   ;;  %s1492_s8 = inlined_call_operand.vmem [shape: f32[2,8,128], index: 8, kind: output, shape index: {0}]   ;;  %s1493_s9 = inlined_call_operand.vmem [shape: f32[2,8,128], index: 9, kind: output, shape index: {1}]   ;;  %s1494_s10 = inlined_call_operand.vmem [shape: f32[2,8,128], index: 10, kind: output, shape index: {2}]  }
   0x1   :  { %s1253_s15 = smov 0  }
   0x2 LB: > { %s30_s16 = sadd.s32 1, %s1185_s14  ;;  %p902_p0 = scmp.ge.s32.totalorder %s1189_s15, 1  ;;  %s1189_s15 = sphi %s1253_s15, %s21_s15   ;;  %s1185_s14 = sphi %s1251_s14, %s1496_s14   ;;  %s1181_s13 = sphi %s1249_s13, %s1495_s13  }
   0x3   : > { %p31_p1 = scmp.ge.s32.totalorder %s30_s16, 2  ;;  %p348_p2 = scmp.lt.s32.totalorder %s1189_s15, 3 }
   0x5   : > { %s1498_s16 = smov (%p31_p1, %s30_s16), 0  ;;  %p349_p3 = pnand %p902_p0, %p348_p2 }
   0x6   : > { %v443_v0 = vld [vmem:[%s1486_s2] sm:$0xff] (!%p349_p3)  ;;  %v444_v1 = vld [vmem:[%s1486_s2 + $0x8] sm:$0xff] (!%p349_p3)  ;;  %v445_v2 = vld [vmem:[%s1486_s2 + $0x10] sm:$0xff] (!%p349_p3)  ;;  %v1191_v3 = vmov (!%p349_p3), 0.0|0.0   ;;  %vm1192_vm0 = vmmov (!%p349_p3), 0   ;;  %v1193_v6 = vmov (!%p349_p3), 0.0  }
   0x7   : > { %352 = sbr.rel (%p349_p3) target bundleno = 287 (0x11f), region = 52  ;;  %1068 = vmatprep.subr.bf16.mxu0 (!%p349_p3), %v1191_v3  ;;  %v1069_v4 = vpack.c.bf16 (!%p349_p3), %v444_v1, %v443_v0  ;;  %v446_v5 = vld [vmem:[%s1486_s2 + $0x18] sm:$0xff] (!%p349_p3)  ;;  %995 = vmatprep.mubr.msk.f32.mxu0 (!%p349_p3), %vm1192_vm0, %v1193_v6  ;;  %v447_v8 = vld [vmem:[%s1486_s2 + $0x20] sm:$0xff] (!%p349_p3)  ;;  %v448_v9 = vld [vmem:[%s1486_s2 + $0x28] sm:$0xff] (!%p349_p3)  ;;  %p408_p4 = scmp.lt.s32.totalorder (!%p349_p3), %s1181_s13, 1 }
   0x8   : > { %1092 = vmatprep.subr.bf16.mxu1 (!%p349_p3), %v1191_v3  ;;  %1030 = vmatprep.mubr.msk.f32.mxu1 (!%p349_p3), %vm1192_vm0, %v1193_v6  ;;  %v1072_v7 = vpack.c.bf16 (!%p349_p3), %v446_v5, %v445_v2  ;;  %v537_v10 = vld [vmem:[%s1487_s3] sm:$0xff] (!%p349_p3)  ;;  %v538_v11 = vld [vmem:[%s1487_s3 + $0x8] sm:$0xff] (!%p349_p3)  ;;  %v1075_v12 = vpack.c.bf16 (!%p349_p3), %v448_v9, %v447_v8  ;;  %v539_v14 = vld [vmem:[%s1487_s3 + $0x10] sm:$0xff] (!%p349_p3) }
   0x9   : > { %1070 = vmatpush3.bf16.msra.mxu0 (!%p349_p3), %v1069_v4  ;;  %v1093_v13 = vpack.c.bf16 (!%p349_p3), %v538_v11, %v537_v10  ;;  %v540_v15 = vld [vmem:[%s1487_s3 + $0x18] sm:$0xff] (!%p349_p3)  ;;  %v449_v16 = vld [vmem:[%s1486_s2 + $0x30] sm:$0xff] (!%p349_p3)  ;;  %v541_v19 = vld [vmem:[%s1487_s3 + $0x20] sm:$0xff] (!%p349_p3) }
   0xa   : > { %1071 = vmatprep.subr.bf16.mxu0 (!%p349_p3), %v1191_v3  ;;  %v450_v17 = vld [vmem:[%s1486_s2 + $0x38] sm:$0xff] (!%p349_p3)  ;;  %v1096_v18 = vpack.c.bf16 (!%p349_p3), %v540_v15, %v539_v14  ;;  %v542_v20 = vld [vmem:[%s1487_s3 + $0x28] sm:$0xff] (!%p349_p3)  ;;  %v451_v22 = vld [vmem:[%s1486_s2 + $0x40] sm:$0xff] (!%p349_p3) }
   0xb   : > { %1094 = vmatpush3.bf16.msra.mxu1 (!%p349_p3), %v1093_v13  ;;  %v1078_v21 = vpack.c.bf16 (!%p349_p3), %v450_v17, %v449_v16  ;;  %v452_v23 = vld [vmem:[%s1486_s2 + $0x48] sm:$0xff] (!%p349_p3)  ;;  %v1099_v24 = vpack.c.bf16 (!%p349_p3), %v542_v20, %v541_v19  ;;  %v543_v25 = vld [vmem:[%s1487_s3 + $0x30] sm:$0xff] (!%p349_p3)  ;;  %v544_v26 = vld [vmem:[%s1487_s3 + $0x38] sm:$0xff] (!%p349_p3) }
   0xc   : > { %1095 = vmatprep.subr.bf16.mxu1 (!%p349_p3), %v1191_v3  ;;  %v1081_v27 = vpack.c.bf16 (!%p349_p3), %v452_v23, %v451_v22  ;;  %v453_v28 = vld [vmem:[%s1486_s2 + $0x50] sm:$0xff] (!%p349_p3)  ;;  %v454_v29 = vld [vmem:[%s1486_s2 + $0x58] sm:$0xff] (!%p349_p3)  ;;  %v1102_v30 = vpack.c.bf16 (!%p349_p3), %v544_v26, %v543_v25  ;;  %v545_v31 = vld [vmem:[%s1487_s3 + $0x40] sm:$0xff] (!%p349_p3) }
   0xd   : > { %1073 = vmatpush3.bf16.msra.mxu0 (!%p349_p3), %v1072_v7  ;;  %v546_v32 = vld [vmem:[%s1487_s3 + $0x48] sm:$0xff] (!%p349_p3)  ;;  %v1084_v33 = vpack.c.bf16 (!%p349_p3), %v454_v29, %v453_v28  ;;  %v455_v34 = vld [vmem:[%s1486_s2 + $0x60] sm:$0xff] (!%p349_p3)  ;;  %v547_v37 = vld [vmem:[%s1487_s3 + $0x50] sm:$0xff] (!%p349_p3) }
   0xe   : > { %1074 = vmatprep.subr.bf16.mxu0 %v1191_v3  ;;  %s1500_s13 = smov (!%p408_p4, %s1181_s13), 1  ;;  %v456_v35 = vld [vmem:[%s1486_s2 + $0x68] sm:$0xff]  ;;  %v1105_v36 = vpack.c.bf16 %v546_v32, %v545_v31  ;;  %v548_v38 = vld [vmem:[%s1487_s3 + $0x58] sm:$0xff]  ;;  %v457_v40 = vld [vmem:[%s1486_s2 + $0x70] sm:$0xff] }
   0xf   : > { %1097 = vmatpush3.bf16.msra.mxu1 %v1096_v18  ;;  %s1357_s17 = sshll.u32 %s1500_s13, 3  ;;  %v1087_v39 = vpack.c.bf16 %v456_v35, %v455_v34  ;;  %v458_v41 = vld [vmem:[%s1486_s2 + $0x78] sm:$0xff]  ;;  %v1108_v42 = vpack.c.bf16 %v548_v38, %v547_v37  ;;  %v549_v43 = vld [vmem:[%s1487_s3 + $0x60] sm:$0xff]  ;;  %v550_v44 = vld [vmem:[%s1487_s3 + $0x68] sm:$0xff] }
  0x10   : > { %1098 = vmatprep.subr.bf16.mxu1 %v1191_v3  ;;  %s414_s27 = scalar_lea.vmem %s1484_s0, %s1357_s17  ;;  %v1090_v45 = vpack.c.bf16 %v458_v41, %v457_v40  ;;  %v441_v47 = vld [vmem:[%s1485_s1] sm:$0xff]  ;;  %v632_v49 = vld [vmem:[%s1488_s4 + $0x8] sm:$0xff]  ;;  %v1111_v50 = vpack.c.bf16 %v550_v44, %v549_v43  ;;  %v551_v52 = vld [vmem:[%s1487_s3 + $0x70] sm:$0xff]  ;;  %s425_s26 = scalar_lea.vmem %s1492_s8, %s1357_s17 }
  0x11   : > { %1076 = vmatpush3.bf16.msra.mxu0 %v1075_v12  ;;  %v440_v46 = vld [vmem:[%s414_s27] sm:$0xff]  ;;  %v552_v53 = vld [vmem:[%s1487_s3 + $0x78] sm:$0xff]  ;;  %v633_v55 = vld [vmem:[%s1488_s4 + $0x10] sm:$0xff]  ;;  %s432_s11 = scalar_lea.vmem %s1493_s9, %s1357_s17  ;;  %s439_s21 = scalar_lea.vmem %s1494_s10, %s1357_s17 }
  0x12   : > { %1077 = vmatprep.subr.bf16.mxu0 %v1191_v3  ;;  %v631_v48 = vld [vmem:[%s1488_s4] sm:$0xff]  ;;  %v442_v51 = vadd.f32 %v441_v47, %v440_v46  ;;  %v634_v56 = vld [vmem:[%s1488_s4 + $0x18] sm:$0xff]  ;;  %v1114_v57 = vpack.c.bf16 %v552_v53, %v551_v52  ;;  %v636_v60 = vld [vmem:[%s1488_s4 + $0x28] sm:$0xff] }
  0x13   : > { %1100 = vmatpush3.bf16.msra.mxu1 %v1099_v24  ;;  %v1117_v54 = vpack.c.bf16 %v632_v49, %v631_v48  ;;  %v1120_v58 = vpack.c.bf16 %v634_v56, %v633_v55  ;;  %v635_v59 = vld [vmem:[%s1488_s4 + $0x20] sm:$0xff]  ;;  %v637_v62 = vld [vmem:[%s1488_s4 + $0x30] sm:$0xff]  ;;  %v638_v63 = vld [vmem:[%s1488_s4 + $0x38] sm:$0xff] }
  0x14   : > { %1101 = vmatprep.subr.bf16.mxu1 %v1191_v3  ;;  %v1123_v61 = vpack.c.bf16 %v636_v60, %v635_v59  ;;  %v1126_v0 = vpack.c.bf16 %v638_v63, %v637_v62  ;;  %v639_v1 = vld [vmem:[%s1488_s4 + $0x40] sm:$0xff]  ;;  %v640_v2 = vld [vmem:[%s1488_s4 + $0x48] sm:$0xff]  ;;  %v641_v5 = vld [vmem:[%s1488_s4 + $0x50] sm:$0xff] }
  0x15   : > { %1079 = vmatpush3.bf16.msra.mxu0 %v1078_v21  ;;  %v1129_v4 = vpack.c.bf16 %v640_v2, %v639_v1  ;;  %v643_v8 = vld [vmem:[%s1488_s4 + $0x60] sm:$0xff]  ;;  %v644_v9 = vld [vmem:[%s1488_s4 + $0x68] sm:$0xff]  ;;  %v645_v11 = vld [vmem:[%s1488_s4 + $0x70] sm:$0xff] }
  0x16   : > { %1080 = vmatprep.subr.bf16.mxu0 %v1191_v3  ;;  %v1135_v10 = vpack.c.bf16 %v644_v9, %v643_v8  ;;  %v646_v12 = vld [vmem:[%s1488_s4 + $0x78] sm:$0xff]  ;;  %v907_v14 = vld [vmem:[%s1489_s5] ss:$0 sm:$0xff] }
  0x17   : > { %1103 = vmatpush3.bf16.msra.mxu1 %v1102_v30  ;;  %v1138_v13 = vpack.c.bf16 %v646_v12, %v645_v11  ;;  %v908_v18 = vld [vmem:[%s1490_s6] ss:$0 sm:$0xff] }
  0x18   : > { %1104 = vmatprep.subr.bf16.mxu1 %v1191_v3  ;;  %v909_v21 = vld [vmem:[%s1491_s7] ss:$0 sm:$0xff] }
  0x19   : > { %1082 = vmatpush3.bf16.msra.mxu0 %v1081_v27 }
  0x1a   : > { %1083 = vmatprep.subr.bf16.mxu0 %v1191_v3 }
  0x1b   : > { %1106 = vmatpush3.bf16.msra.mxu1 %v1105_v36 }
  0x1c   : > { %1107 = vmatprep.subr.bf16.mxu1 %v1191_v3 }
  0x1d   : > { %1085 = vmatpush3.bf16.msra.mxu0 %v1084_v33 }
  0x1e   : > { %1086 = vmatprep.subr.bf16.mxu0 %v1191_v3 }
  0x1f   : > { %1109 = vmatpush3.bf16.msra.mxu1 %v1108_v42 }
  0x20   : > { %1110 = vmatprep.subr.bf16.mxu1 %v1191_v3 }
  0x21   : > { %1088 = vmatpush3.bf16.msra.mxu0 %v1087_v39 }
  0x22   : > { %1089 = vmatprep.subr.bf16.mxu0 %v1191_v3 }
  0x23   : > { %1112 = vmatpush3.bf16.msra.mxu1 %v1111_v50 }
  0x24   : > { %1113 = vmatprep.subr.bf16.mxu1 %v1191_v3 }
  0x25   : > { %1091 = vmatpush3.bf16.msra.mxu0 %v1090_v45 }
  0x26   : > { %1116 = vmatprep.subr.bf16.mxu0 %v1191_v3 }
  0x27   : > { %1115 = vmatpush3.bf16.msra.mxu1 %v1114_v57 }
  0x28   : > { %996 = vmatmul.mubr.f32.vlgmr.msra.gmra.mrb[0].mxu0 %v442_v51 }
  0x29   : > { %1118 = vmatpush3.bf16.msra.mxu0 %v1117_v54  ;;  %1065 = vmatprep.mubr.msk.f32.mxu0 %vm1192_vm0, %v1193_v6  ;;  %v642_v6 = vld [vmem:[%s1488_s4 + $0x58] sm:$0xff] }
  0x2a   : > { %1119 = vmatprep.subr.bf16.mxu0 %v1191_v3  ;;  %1031 = vmatmul.mubr.f32.vlgmr.msra.gmra.mrb[0].mxu1 %v442_v51  ;;  %v1132_v7 = vpack.c.bf16 %v642_v6, %v641_v5 }
  0x2d   : > { %1121 = vmatpush3.bf16.msra.mxu0 %v1120_v58 }
  0x2e   : > { %1122 = vmatprep.subr.bf16.mxu0 %v1191_v3 }
  0x31   : > { %1124 = vmatpush3.bf16.msra.mxu0 %v1123_v61 }
  0x32   : > { %1125 = vmatprep.subr.bf16.mxu0 %v1191_v3 }
  0x35   : > { %1127 = vmatpush3.bf16.msra.mxu0 %v1126_v0 }
  0x36   : > { %1128 = vmatprep.subr.bf16.mxu0 %v1191_v3 }
  0x39   : > { %1130 = vmatpush3.bf16.msra.mxu0 %v1129_v4 }
  0x3a   : > { %1131 = vmatprep.subr.bf16.mxu0 %v1191_v3 }
  0x3d   : > { %1133 = vmatpush3.bf16.msra.mxu0 %v1132_v7 }
  0x3e   : > { %1134 = vmatprep.subr.bf16.mxu0 %v1191_v3 }
  0x41   : > { %1136 = vmatpush3.bf16.msra.mxu0 %v1135_v10 }
  0x42   : > { %1137 = vmatprep.subr.bf16.mxu0 %v1191_v3 }
  0x45   : > { %1139 = vmatpush3.bf16.msra.mxu0 %v1138_v13 }
  0x48   : > { %1066 = vmatmul.mubr.f32.vlgmr.msra.gmra.mrb[2].mxu0 %v442_v51 }
  0xfb   : > { %v532_v15 = vpop.f32.mrb[0].mxu0 }
  0xfc   : > { %v533_v16 = vadd.f32 %v907_v14, %v532_v15  ;;  %v997_v17 = vpop.f32.mrb[1].mxu0 }
  0xfd   : > { %v626_v3 = vpop.f32.mrb[0].mxu1 }
  0xfe   : > { %536 = vst [vmem:[%s425_s26] sm:$0xff] %v533_v16  ;;  %v627_v19 = vadd.f32 %v908_v18, %v626_v3  ;;  %v1032_v20 = vpop.f32.mrb[1].mxu1 }
 0x100   : > { %630 = vst [vmem:[%s432_s11] sm:$0xff] %v627_v19 }
 0x11b   : > { %v720_v22 = vpop.f32.mrb[2].mxu0 }
 0x11c   : > { %v721_v23 = vadd.f32 %v909_v21, %v720_v22  ;;  %v1067_v24 = vpop.f32.mrb[3].mxu0 }
 0x11e   : > { %724 = vst [vmem:[%s439_s21] sm:$0xff] %v721_v23 }
 0x11f PF: > { %s21_s15 = sadd.s32 1, %s1189_s15   ;;  %s1495_s13 = smov %s1185_s14 }
 0x120   : > { %p18_p5 = scmp.ge.s32.totalorder %s21_s15, 4   ;;  %s1496_s14 = smov %s1498_s16 }
 0x122   :  { %20 = sbr.rel (!%p18_p5) target bundleno = 2 (0x2), region = 109 }

// kernel: transformer_forward.7
= control target key start
LH: loop header
LB: loop body
LE: loop exit
PB: predicated region body
PF: predicated region fallthrough
CT: control target
= control target key end

     0   :  { %s768_s24 = smov 0   ;;  %s770_s25 = smov 0   ;;  %s873_s0 = inlined_call_operand.vmem [shape: f32[2,8,128], index: 0, kind: input, shape index: {}]   ;;  %s874_s1 = inlined_call_operand.vmem [shape: f32[2,8,128], index: 1, kind: input, shape index: {}]   ;;  %s875_s2 = inlined_call_operand.vmem [shape: f32[8,128], index: 2, kind: input, shape index: {}]   ;;  %s876_s3 = inlined_call_operand.vmem [shape: f32[128,128], index: 3, kind: input, shape index: {}]   ;;  %s877_s4 = inlined_call_operand.vmem [shape: f32[1,128], index: 4, kind: input, shape index: {}]   ;;  %s878_s5 = inlined_call_operand.vmem [shape: f32[1,128], index: 5, kind: input, shape index: {}]   ;;  %s879_s6 = inlined_call_operand.vmem [shape: f32[1,128], index: 6, kind: input, shape index: {}]   ;;  %s880_s7 = inlined_call_operand.vmem [shape: f32[2,8,128], index: 7, kind: output, shape index: {}]  }
   0x1   :  { %s772_s26 = smov 0  }
   0x2 LB: > { %s26_s27 = sadd.s32 1, %s719_s25  ;;  %p587_p0 = scmp.ge.s32.totalorder %s723_s26, 1  ;;  %s723_s26 = sphi %s772_s26, %s17_s26   ;;  %s719_s25 = sphi %s770_s25, %s882_s25   ;;  %s715_s24 = sphi %s768_s24, %s881_s24  }
   0x3   : > { %p27_p1 = scmp.ge.s32.totalorder %s26_s27, 2  ;;  %p278_p2 = scmp.lt.s32.totalorder %s723_s26, 3 }
   0x5   : > { %s884_s27 = smov (%p27_p1, %s26_s27), 0  ;;  %p279_p3 = pnand %p587_p0, %p278_p2 }
   0x6   : > { %v351_v0 = vld [vmem:[%s876_s3] sm:$0xff] (!%p279_p3)  ;;  %v352_v1 = vld [vmem:[%s876_s3 + $0x8] sm:$0xff] (!%p279_p3)  ;;  %v353_v2 = vld [vmem:[%s876_s3 + $0x10] sm:$0xff] (!%p279_p3)  ;;  %v725_v3 = vmov (!%p279_p3), 0.0|0.0   ;;  %vm726_vm0 = vmmov (!%p279_p3), 0   ;;  %v727_v6 = vmov (!%p279_p3), 0.0  }
   0x7   : > { %282 = sbr.rel (%p279_p3) target bundleno = 568 (0x238), region = 48  ;;  %648 = vmatprep.subr.bf16.mxu0 (!%p279_p3), %v725_v3  ;;  %v649_v4 = vpack.c.bf16 (!%p279_p3), %v352_v1, %v351_v0  ;;  %v354_v5 = vld [vmem:[%s876_s3 + $0x18] sm:$0xff] (!%p279_p3)  ;;  %645 = vmatprep.mubr.msk.f32.mxu0 (!%p279_p3), %vm726_vm0, %v727_v6  ;;  %v355_v8 = vld [vmem:[%s876_s3 + $0x20] sm:$0xff] (!%p279_p3)  ;;  %v356_v9 = vld [vmem:[%s876_s3 + $0x28] sm:$0xff] (!%p279_p3)  ;;  %p325_p4 = scmp.lt.s32.totalorder (!%p279_p3), %s715_s24, 1 }
   0x8   : > { %v652_v7 = vpack.c.bf16 (!%p279_p3), %v354_v5, %v353_v2  ;;  %v655_v10 = vpack.c.bf16 (!%p279_p3), %v356_v9, %v355_v8  ;;  %v357_v11 = vld [vmem:[%s876_s3 + $0x30] sm:$0xff] (!%p279_p3)  ;;  %v358_v12 = vld [vmem:[%s876_s3 + $0x38] sm:$0xff] (!%p279_p3)  ;;  %v359_v14 = vld [vmem:[%s876_s3 + $0x40] sm:$0xff] (!%p279_p3) }
   0x9   : > { %650 = vmatpush3.bf16.msra.mxu0 (!%p279_p3), %v649_v4  ;;  %v658_v13 = vpack.c.bf16 (!%p279_p3), %v358_v12, %v357_v11  ;;  %v360_v15 = vld [vmem:[%s876_s3 + $0x48] sm:$0xff] (!%p279_p3)  ;;  %v361_v17 = vld [vmem:[%s876_s3 + $0x50] sm:$0xff] (!%p279_p3)  ;;  %v362_v18 = vld [vmem:[%s876_s3 + $0x58] sm:$0xff] (!%p279_p3) }
   0xa   : > { %651 = vmatprep.subr.bf16.mxu0 (!%p279_p3), %v725_v3  ;;  %v661_v16 = vpack.c.bf16 (!%p279_p3), %v360_v15, %v359_v14  ;;  %v664_v19 = vpack.c.bf16 (!%p279_p3), %v362_v18, %v361_v17  ;;  %v363_v20 = vld [vmem:[%s876_s3 + $0x60] sm:$0xff] (!%p279_p3)  ;;  %v364_v21 = vld [vmem:[%s876_s3 + $0x68] sm:$0xff] (!%p279_p3)  ;;  %v365_v23 = vld [vmem:[%s876_s3 + $0x70] sm:$0xff] (!%p279_p3) }
   0xb   : > { %v667_v22 = vpack.c.bf16 (!%p279_p3), %v364_v21, %v363_v20  ;;  %v366_v24 = vld [vmem:[%s876_s3 + $0x78] sm:$0xff] (!%p279_p3)  ;;  %v445_v28 = vld [vmem:[%s875_s2] sm:$0xff] (!%p279_p3) }
   0xc   : > { %v670_v25 = vpack.c.bf16 (!%p279_p3), %v366_v24, %v365_v23  ;;  %v591_v29 = vld [vmem:[%s877_s4] ss:$0 sm:$0xff] (!%p279_p3) }
   0xd   : > { %653 = vmatpush3.bf16.msra.mxu0 (!%p279_p3), %v652_v7  ;;  %v592_v43 = vld [vmem:[%s878_s5] ss:$0 sm:$0xff] (!%p279_p3) }
   0xe   : > { %654 = vmatprep.subr.bf16.mxu0 %v725_v3  ;;  %s886_s24 = smov (!%p325_p4, %s715_s24), 1  ;;  %v593_v45 = vld [vmem:[%s879_s6] ss:$0 sm:$0xff] }
   0xf   : > { %s838_s18 = sshll.u32 %s886_s24, 3 }
  0x10   : > { %s331_s21 = scalar_lea.vmem %s873_s0, %s838_s18  ;;  %s338_s28 = scalar_lea.vmem %s874_s1, %s838_s18 }
  0x11   : > { %656 = vmatpush3.bf16.msra.mxu0 %v655_v10  ;;  %v350_v26 = vld [vmem:[%s331_s21] sm:$0xff]  ;;  %s349_s15 = scalar_lea.vmem %s880_s7, %s838_s18 }
  0x12   : > { %657 = vmatprep.subr.bf16.mxu0 %v725_v3  ;;  %v444_v27 = vld [vmem:[%s338_s28] sm:$0xff] }
  0x13   : > { %v446_v30 = vadd.f32 %v445_v28, %v444_v27 }
  0x15   : > { %659 = vmatpush3.bf16.msra.mxu0 %v658_v13 }
  0x16   : > { %660 = vmatprep.subr.bf16.mxu0 %v725_v3 }
  0x19   : > { %662 = vmatpush3.bf16.msra.mxu0 %v661_v16 }
  0x1a   : > { %663 = vmatprep.subr.bf16.mxu0 %v725_v3 }
  0x1d   : > { %665 = vmatpush3.bf16.msra.mxu0 %v664_v19 }
  0x1e   : > { %666 = vmatprep.subr.bf16.mxu0 %v725_v3 }
  0x21   : > { %668 = vmatpush3.bf16.msra.mxu0 %v667_v22 }
  0x22   : > { %669 = vmatprep.subr.bf16.mxu0 %v725_v3 }
  0x25   : > { %671 = vmatpush3.bf16.msra.mxu0 %v670_v25 }
  0x28   : > { %646 = vmatmul.mubr.f32.vlgmr.msra.gmra.mrb[0].mxu0 %v350_v26 }
  0xfb   : > { %v440_v31 = vpop.f32.mrb[0].mxu0 }
  0xfc   : > { %v441_v32 = vadd.f32 %v591_v29, %v440_v31  ;;  %v647_v33 = vpop.f32.mrb[1].mxu0 }
  0xfe   : > { %v447_v34 = vadd.f32 %v446_v30, %v441_v32 }
 0x100   : > { %448 = vadd.xlane.f32.xlu0 %v447_v34 }
 0x18d   : > { %v449_v35 = vpop.xlane.xlu0 %448 }
 0x18e   : > { %v451_v36 = vmul.f32 0.0078125, %v449_v35 }
 0x190   : > { %v452_v37 = vsub.f32 %v447_v34, %v451_v36 }
 0x192   : > { %v453_v38 = vmul.f32 %v452_v37, %v452_v37 }
 0x194   : > { %454 = vadd.xlane.f32.xlu0 %v453_v38 }
 0x221   : > { %v455_v39 = vpop.xlane.xlu0 %454 }
 0x222   : > { %v456_v40 = vmul.f32 0.0078125, %v455_v39 }
 0x224   : > { %v457_v41 = vadd.f32 1e-05, %v456_v40 }
 0x226   : > { %699 = vrsqrt.f32 %v457_v41 }
 0x230   : > { %v700_v42 = vpop.eup %699 }
 0x231   : > { %v459_v44 = vmul.f32 %v700_v42, %v452_v37 }
 0x233   : > { %v467_v46 = vmul.f32 %v592_v43, %v459_v44 }
 0x235   : > { %v475_v47 = vadd.f32 %v593_v45, %v467_v46 }
 0x237   : > { %476 = vst [vmem:[%s349_s15] sm:$0xff] %v475_v47 }
 0x238 PF: > { %s17_s26 = sadd.s32 1, %s723_s26   ;;  %s881_s24 = smov %s719_s25 }
 0x239   : > { %p14_p5 = scmp.ge.s32.totalorder %s17_s26, 4   ;;  %s882_s25 = smov %s884_s27 }
 0x23b   :  { %16 = sbr.rel (!%p14_p5) target bundleno = 2 (0x2), region = 84 }

// kernel: transformer_forward.6
= control target key start
LH: loop header
LB: loop body
LE: loop exit
PB: predicated region body
PF: predicated region fallthrough
CT: control target
= control target key end

     0   :  { %s1098_s12 = smov 0   ;;  %s1187_s0 = inlined_call_operand.vmem [shape: f32[2,8,128], index: 0, kind: input, shape index: {}]   ;;  %s1188_s1 = inlined_call_operand.vmem [shape: f32[2,8,128], index: 1, kind: input, shape index: {}]   ;;  %s1189_s2 = inlined_call_operand.vmem [shape: f32[2,8,128], index: 2, kind: input, shape index: {}]   ;;  %s1190_s3 = inlined_call_operand.vmem [shape: f32[2,8,128], index: 3, kind: output, shape index: {}]  }
   0x1 LB: > { %s957_s13 = sadd.s32 4294967295, %s1071_s12   ;;  %p961_p0 = scmp.ge.s32.totalorder %s1071_s12, 1  ;;  %s1071_s12 = sphi %s1098_s12, %s13_s12  }
   0x2   : > { %p154_p1 = scmp.lt.s32.totalorder %s1071_s12, 3 }
   0x4   : > { %p155_p2 = pnand %p961_p0, %p154_p1 }
   0x5   : > { %p184_p3 = scmp.lt.s32.totalorder (!%p155_p2), %s957_s13, 1  ;;  %v1073_v0 = vmov (!%p155_p2), 0.0   ;;  %vm1074_vm0 = vmmov (!%p155_p2), 0   ;;  %vm204_vm1 = vcmask (!%p155_p2), 261120   ;;  %vm281_vm2 = vcmask (!%p155_p2), 64512   ;;  %s1075_s21 = smov (!%p155_p2), 96  }
   0x6   : > { %158 = sbr.rel (%p155_p2) target bundleno = 1458 (0x5b2), region = 32  ;;  %996 = vmatprep.subr.mxu0 (!%p155_p2), %v1073_v0  ;;  %998 = vmatprep.mubr.msk.f32.mxu0 (!%p155_p2), %vm1074_vm0, %v1073_v0  ;;  %s1076_s22 = smov (!%p155_p2), 64   ;;  %vm875_vm3 = vcmask (!%p155_p2), 523264   ;;  %vm877_vm4 = vcmask (!%p155_p2), 785408  }
   0x7   : > { %1001 = vmatprep.subr.mxu1 (!%p155_p2), %v1073_v0  ;;  %1003 = vmatprep.mubr.msk.f32.mxu1 (!%p155_p2), %vm1074_vm0, %v1073_v0  ;;  %s1077_s23 = smov (!%p155_p2), 32  }
   0xd   : > { %s1192_s13 = smov (!%p184_p3, %s957_s13), 1 }
   0xe   : > { %s1112_s14 = sshll.u32 %s1192_s13, 3 }
   0xf   : > { %s191_s17 = scalar_lea.vmem %s1188_s1, %s1112_s14  ;;  %s187_s20 = scalar_lea.vmem %s1187_s0, %s1112_s14 }
  0x10   : > { %v202_v1 = vld [vmem:[%s191_s17] sm:$0xff]  ;;  %s195_s26 = scalar_lea.vmem %s1189_s2, %s1112_s14  ;;  %s199_s29 = scalar_lea.vmem %s1190_s3, %s1112_s14 }
  0x11   : > { %v200_v2 = vld [vmem:[%s187_s20] sm:$0xff]  ;;  %997 = vmatpush3.xpose.msk.msra.mxu0 %vm204_vm1, %v202_v1  ;;  %368 = vrot.lane.b32.xlu1 %v202_v1, %s1075_s21 }
  0x12   : > { %v201_v3 = vmul.f32 0.17677669, %v200_v2  ;;  %1011 = vmatprep.subr.mxu0 %v1073_v0  ;;  %v203_v12 = vld [vmem:[%s195_s26] sm:$0xff] }
  0x13   : > { %1002 = vmatpush3.msra.mxu1 %v203_v12 }
  0x14   : > { %999 = vmatmul.mubr.msk.f32.vlgmr.msra.gmra.mrb[0].mxu0 %vm204_vm1, %v201_v3  ;;  %1006 = vmatprep.subr.mxu1 %v1073_v0 }
  0x15   : > { %1013 = vmatprep.mubr.msk.f32.mxu0 %vm1074_vm0, %v1073_v0  ;;  %366 = vrot.lane.b32.xlu1 %v201_v3, %s1075_s21 }
  0x19   : > { %532 = vrot.lane.b32.xlu1 %v201_v3, %s1076_s22 }
  0x1d   : > { %699 = vrot.lane.b32.xlu1 %v202_v1, %s1077_s23 }
  0x21   : > { %697 = vrot.lane.b32.xlu1 %v201_v3, %s1077_s23 }
  0x83   : > { %v369_v13 = vpop.permute.xlu1 %368 }
  0x87   : > { %v367_v15 = vpop.permute.xlu1 %366 }
  0x8b   : > { %v533_v17 = vpop.permute.xlu1 %532 }
  0x8f   : > { %v700_v20 = vpop.permute.xlu1 %699 }
  0x93   : > { %v698_v21 = vpop.permute.xlu1 %697 }
  0xe7   : > { %v277_v4 = vpop.f32.mrb[0].mxu0 }
  0xe8   : > { %v1000_v5 = vpop.f32.mrb[1].mxu0  ;;  %v282_v6 = vsel %vm281_vm2, %v277_v4, -inf }
  0xe9   : > { %283 = vmax.xlane.f32.xlu0 %v282_v6 }
 0x176   : > { %v284_v7 = vpop.xlane.xlu0 %283 }
 0x177   : > { %v285_v8 = vsub.f32 %v277_v4, %v284_v7 }
 0x179   : > { %v286_v9 = vmul.f32 1.442695, %v285_v8 }
 0x17b   : > { %1049 = vpow2.f32 %v286_v9 }
 0x185   : > { %v1050_v10 = vpop.eup %1049 }
 0x186   : > { %v288_v11 = vsel %vm281_vm2, %v1050_v10, 0.0 }
 0x187   : > { %289 = vadd.xlane.f32.xlu0 %v288_v11 }
 0x19d   : > { %534 = vrot.lane.b32.xlu0 %v202_v1, %s1076_s22 }
 0x214   : > { %v290_v14 = vpop.xlane.xlu0 %289 }
 0x215   : > { %1051 = vrcp.f32 %v290_v14 }
 0x218   : > { %v535_v19 = vpop.permute.xlu0 %534 }
 0x21f   : > { %v1052_v16 = vpop.eup %1051 }
 0x220   : > { %v292_v18 = vmul.f32 %v1052_v16, %v1050_v10 }
 0x222   : > { %1004 = vmatmul.mubr.msk.f32.vlgmr.msra.gmra.mrb[0].mxu1 %vm281_vm2, %v292_v18 }
 0x223   : > { %1007 = vmatpush3.xpose.msk.msra.mxu1 %vm204_vm1, %v369_v13  ;;  %1008 = vmatprep.mubr.msk.f32.mxu1 %vm1074_vm0, %v1073_v0 }
 0x224   : > { %1016 = vmatprep.subr.mxu1 %v1073_v0 }
 0x226   : > { %1009 = vmatmul.mubr.msk.f32.vlgmr.msra.gmra.mrb[2].mxu1 %vm204_vm1, %v367_v15 }
 0x227   : > { %1017 = vmatpush3.xpose.msk.msra.mxu1 %vm204_vm1, %v535_v19  ;;  %1018 = vmatprep.mubr.msk.f32.mxu1 %vm1074_vm0, %v1073_v0 }
 0x228   : > { %1026 = vmatprep.subr.mxu1 %v1073_v0 }
 0x22a   : > { %1019 = vmatmul.mubr.msk.f32.vlgmr.msra.gmra.mrb[4].mxu1 %vm204_vm1, %v533_v17 }
 0x22b   : > { %1027 = vmatpush3.xpose.msk.msra.mxu1 %vm204_vm1, %v700_v20  ;;  %1028 = vmatprep.mubr.msk.f32.mxu1 %vm1074_vm0, %v1073_v0 }
 0x22e   : > { %1029 = vmatmul.mubr.msk.f32.vlgmr.msra.gmra.mrb[6].mxu1 %vm204_vm1, %v698_v21 }
 0x2f5   : > { %v1155_v22 = vpop.f32.mrb[0].mxu1 }
 0x2f6   : > { %v1005_v23 = vpop.f32.mrb[1].mxu1 }
 0x2f9   : > { %v440_v24 = vpop.f32.mrb[2].mxu1 }
 0x2fa   : > { %v1010_v25 = vpop.f32.mrb[3].mxu1  ;;  %v444_v26 = vsel %vm281_vm2, %v440_v24, -inf }
 0x2fb   : > { %445 = vmax.xlane.f32.xlu1 %v444_v26 }
 0x2fd   : > { %v606_v27 = vpop.f32.mrb[4].mxu1 }
 0x2fe   : > { %v610_v28 = vsel %vm281_vm2, %v606_v27, -inf  ;;  %v1020_v29 = vpop.f32.mrb[5].mxu1 }
 0x2ff   : > { %611 = vmax.xlane.f32.xlu0 %v610_v28 }
 0x301   : > { %v771_v30 = vpop.f32.mrb[6].mxu1 }
 0x302   : > { %v775_v31 = vsel %vm281_vm2, %v771_v30, -inf  ;;  %v1030_v32 = vpop.f32.mrb[7].mxu1 }
 0x303   : > { %776 = vmax.xlane.f32.xlu1 %v775_v31 }
 0x388   : > { %v446_v33 = vpop.xlane.xlu1 %445 }
 0x389   : > { %v447_v34 = vsub.f32 %v440_v24, %v446_v33 }
 0x38b   : > { %v448_v35 = vmul.f32 1.442695, %v447_v34 }
 0x38c   : > { %v612_v36 = vpop.xlane.xlu0 %611 }
 0x38d   : > { %1053 = vpow2.f32 %v448_v35  ;;  %v613_v37 = vsub.f32 %v606_v27, %v612_v36 }
 0x38f   : > { %v614_v38 = vmul.f32 1.442695, %v613_v37 }
 0x390   : > { %v777_v43 = vpop.xlane.xlu1 %776 }
 0x391   : > { %1055 = vpow2.f32 %v614_v38  ;;  %v778_v44 = vsub.f32 %v771_v30, %v777_v43 }
 0x393   : > { %v779_v45 = vmul.f32 1.442695, %v778_v44 }
 0x395   : > { %1057 = vpow2.f32 %v779_v45 }
 0x397   : > { %v1054_v39 = vpop.eup %1053 }
 0x398   : > { %v450_v40 = vsel %vm281_vm2, %v1054_v39, 0.0 }
 0x399   : > { %451 = vadd.xlane.f32.xlu1 %v450_v40 }
 0x39b   : > { %v1056_v41 = vpop.eup %1055 }
 0x39c   : > { %v616_v42 = vsel %vm281_vm2, %v1056_v41, 0.0 }
 0x39d   : > { %617 = vadd.xlane.f32.xlu0 %v616_v42 }
 0x39f   : > { %v1058_v46 = vpop.eup %1057 }
 0x3a0   : > { %v781_v47 = vsel %vm281_vm2, %v1058_v46, 0.0 }
 0x3aa   : > { %621 = vrot.lane.b32.xlu1 %v203_v12, %s1076_s22 }
 0x3b3   : > { %456 = vrot.lane.b32.xlu0 %v203_v12, %s1075_s21 }
 0x3ce   : > { %782 = vadd.xlane.f32.xlu1 %v781_v47 }
 0x3df   : > { %786 = vrot.lane.b32.xlu1 %v203_v12, %s1077_s23 }
 0x426   : > { %v452_v48 = vpop.xlane.xlu1 %451 }
 0x427   : > { %1059 = vrcp.f32 %v452_v48 }
 0x42a   : > { %v618_v49 = vpop.xlane.xlu0 %617  ;;  %v622_v53 = vpop.permute.xlu1 %621 }
 0x42b   : > { %1061 = vrcp.f32 %v618_v49 }
 0x42e   : > { %v457_v50 = vpop.permute.xlu0 %456 }
 0x42f   : > { %1012 = vmatpush3.msra.mxu0 %v457_v50 }
 0x430   : > { %1021 = vmatprep.subr.mxu0 %v1073_v0 }
 0x431   : > { %v1060_v51 = vpop.eup %1059 }
 0x432   : > { %v454_v52 = vmul.f32 %v1060_v51, %v1054_v39 }
 0x434   : > { %1014 = vmatmul.mubr.msk.f32.vlgmr.msra.gmra.mrb[2].mxu0 %vm281_vm2, %v454_v52 }
 0x435   : > { %v1062_v54 = vpop.eup %1061  ;;  %1022 = vmatpush3.msra.mxu0 %v622_v53  ;;  %1023 = vmatprep.mubr.msk.f32.mxu0 %vm1074_vm0, %v1073_v0 }
 0x436   : > { %v620_v55 = vmul.f32 %v1062_v54, %v1056_v41  ;;  %1031 = vmatprep.subr.mxu0 %v1073_v0 }
 0x438   : > { %1024 = vmatmul.mubr.msk.f32.vlgmr.msra.gmra.mrb[4].mxu0 %vm281_vm2, %v620_v55 }
 0x439   : > { %1033 = vmatprep.mubr.msk.f32.mxu0 %vm1074_vm0, %v1073_v0 }
 0x45b   : > { %v783_v56 = vpop.xlane.xlu1 %782 }
 0x45c   : > { %1063 = vrcp.f32 %v783_v56 }
 0x45f   : > { %v787_v57 = vpop.permute.xlu1 %786 }
 0x460   : > { %1032 = vmatpush3.msra.mxu0 %v787_v57 }
 0x466   : > { %v1064_v58 = vpop.eup %1063 }
 0x467   : > { %v785_v59 = vmul.f32 %v1064_v58, %v1058_v46 }
 0x469   : > { %1034 = vmatmul.mubr.msk.f32.vlgmr.msra.gmra.mrb[6].mxu0 %vm281_vm2, %v785_v59 }
 0x507   : > { %v528_v60 = vpop.f32.mrb[2].mxu0 }
 0x508   : > { %863 = vrot.lane.b32.xlu0 %v528_v60, %s1077_s23  ;;  %v1015_v61 = vpop.f32.mrb[3].mxu0 }
 0x50b   : > { %v693_v62 = vpop.f32.mrb[4].mxu0 }
 0x50c   : > { %867 = vrot.lane.b32.xlu1 %v693_v62, %s1076_s22  ;;  %v1025_v63 = vpop.f32.mrb[5].mxu0 }
 0x53c   : > { %v858_v1 = vpop.f32.mrb[6].mxu0 }
 0x53d   : > { %871 = vrot.lane.b32.xlu0 %v858_v1, %s1075_s21  ;;  %v1035_v0 = vpop.f32.mrb[7].mxu0 }
 0x57a   : > { %v864_v2 = vpop.permute.xlu0 %863 }
 0x57b   : > { %v874_v4 = vsel %vm204_vm1, %v1155_v22, %v864_v2 }
 0x57e   : > { %v868_v3 = vpop.permute.xlu1 %867 }
 0x57f   : > { %v876_v5 = vsel %vm875_vm3, %v874_v4, %v868_v3 }
 0x5af   : > { %v872_v6 = vpop.permute.xlu0 %871 }
 0x5b0   : > { %v878_v7 = vsel %vm877_vm4, %v876_v5, %v872_v6 }
 0x5b1   : > { %879 = vst [vmem:[%s199_s29] sm:$0xff] %v878_v7 }
 0x5b2 PF: > { %s13_s12 = sadd.s32 1, %s1071_s12  }
 0x5b3   : > { %p10_p4 = scmp.ge.s32.totalorder %s13_s12, 4  }
 0x5b5   :  { %12 = sbr.rel (!%p10_p4) target bundleno = 1 (0x1), region = 68 }

// kernel: transformer_forward.8
= control target key start
LH: loop header
LB: loop body
LE: loop exit
PB: predicated region body
PF: predicated region fallthrough
CT: control target
= control target key end

     0   :  { %s1342_s0 = inlined_call_operand.vmem [shape: f32[2,8,128], index: 0, kind: input, shape index: {}]   ;;  %s1343_s1 = inlined_call_operand.vmem [shape: f32[128,256], index: 1, kind: input, shape index: {}]   ;;  %s1344_s2 = inlined_call_operand.vmem [shape: f32[1,256], index: 2, kind: input, shape index: {}]   ;;  %s1345_s3 = inlined_call_operand.vmem [shape: f32[256,128], index: 3, kind: input, shape index: {}]   ;;  %s1346_s4 = inlined_call_operand.vmem [shape: f32[1,128], index: 4, kind: input, shape index: {}]   ;;  %s1347_s5 = inlined_call_operand.vmem [shape: f32[1,128], index: 5, kind: input, shape index: {}]   ;;  %s1348_s6 = inlined_call_operand.vmem [shape: f32[1,128], index: 6, kind: input, shape index: {}]   ;;  %s1349_s7 = inlined_call_operand.vmem [shape: f32[2,8,128], index: 7, kind: output, shape index: {}]  }
   0x1   :  { %1351 = sst [smem:[#allocation6_spill]] %s1343_s1 }
   0x2   :  { %s1148_s24 = smov 0   ;;  %s1150_s25 = smov 0  }
   0x3   :  { %s1152_s26 = smov 0   ;;  %s1154_s27 = smov 0  }
   0x4   :  { %s1156_s28 = smov 0   ;;  %s1158_s29 = smov 0  }
   0x5   :  { %s1160_s30 = smov 0  }
   0x6 LB: > { %s29_s8 = sadd.s32 1, %s1094_s28  ;;  %s32_s9 = sadd.s32 1, %s1098_s29  ;;  %s1102_s30 = sphi %s1160_s30, %s17_s30   ;;  %s1098_s29 = sphi %s1158_s29, %s1362_s29   ;;  %s1094_s28 = sphi %s1156_s28, %s1361_s28   ;;  %s1090_s27 = sphi %s1154_s27, %s1360_s27   ;;  %s1086_s26 = sphi %s1152_s26, %s1359_s26   ;;  %s1082_s25 = sphi %s1150_s25, %s1358_s25   ;;  %s1078_s24 = sphi %s1148_s24, %s1357_s24  }
   0x7   : > { %p30_p0 = scmp.ge.s32.totalorder %s29_s8, 2  ;;  %s71_s10 = sadd.s32 1, %s1082_s25 }
   0x8   : > { %p78_p1 = scmp.ne.s32.totalorder %s1082_s25, %s1078_s24  ;;  %p79_p2 = scmp.eq.s32.totalorder %s1102_s30, 0 }
   0x9   : > { %s1364_s8 = smov (%p30_p0, %s29_s8), 0  ;;  %s1366_s9 = smov (!%p30_p0, %s32_s9), %s1098_s29 }
   0xa   : > { %1352 = sst [smem:[#allocation4_spill]] %s1364_s8  ;;  %s68_s11 = ssub.s32 %s1094_s28, %s1364_s8 }
   0xb   : > { %p80_p3 = por %p79_p2, %p78_p1  ;;  %p34_p4 = scmp.ge.s32.totalorder %s1366_s9, 2 }
   0xc   : > { %p69_p5 = scmp.eq.s32.totalorder %s68_s11, 0  ;;  %p817_p6 = scmp.ge.s32.totalorder %s1102_s30, 4 }
   0xd   : > { %s1368_s9 = smov (%p34_p4, %s1366_s9), 0 }
   0xe   : > { %1353 = sst [smem:[#allocation5_spill]] %s1368_s9  ;;  %256 = sbr.rel (%p817_p6) target bundleno = 39 (0x27), region = 28 }
   0xf   : > { %s1197_s12 = scalar_select %p69_p5, %s1082_s25, %s71_s10  }
  0x15   : > { %269 = sbr.rel (!%p80_p3) target bundleno = 39 (0x27), region = 36  ;;  %s271_s13 = sand.u32 (%p80_p3), 1, %s1082_s25  }
  0x16   : > { %s819_s14 = sshll.u32 (%p80_p3), %s1094_s28, 3  ;;  %s818_s15 = sshll.u32 (%p80_p3), %s271_s13, 7 }
  0x17   : > { %s1354_s1 = sld [smem:[#allocation6_spill]] (%p80_p3)  ;;  %s273_s19 = scalar_lea.vmem (%p80_p3), [#allocation3], %s818_s15 }
  0x1d   : > { %s1205_s18 = scalar_lea.vmem %s1354_s1, %s819_s14 }
  0x1e   : > { %v333_v0 = vld [vmem:[%s1205_s18] sm:$0xff]  ;;  %v335_v1 = vld [vmem:[%s1205_s18 + $0x10] sm:$0xff] }
  0x1f   : > { %v337_v2 = vld [vmem:[%s1205_s18 + $0x20] sm:$0xff]  ;;  %334 = vst [vmem:[%s273_s19] sm:$0xff] %v333_v0  ;;  %336 = vst [vmem:[%s273_s19 + $0x8] sm:$0xff] %v335_v1  ;;  %v339_v3 = vld [vmem:[%s1205_s18 + $0x30] sm:$0xff] }
  0x20   : > { %338 = vst [vmem:[%s273_s19 + $0x10] sm:$0xff] %v337_v2  ;;  %v341_v4 = vld [vmem:[%s1205_s18 + $0x40] sm:$0xff]  ;;  %v343_v5 = vld [vmem:[%s1205_s18 + $0x50] sm:$0xff]  ;;  %340 = vst [vmem:[%s273_s19 + $0x18] sm:$0xff] %v339_v3 }
  0x21   : > { %342 = vst [vmem:[%s273_s19 + $0x20] sm:$0xff] %v341_v4  ;;  %344 = vst [vmem:[%s273_s19 + $0x28] sm:$0xff] %v343_v5  ;;  %v345_v6 = vld [vmem:[%s1205_s18 + $0x60] sm:$0xff]  ;;  %v347_v7 = vld [vmem:[%s1205_s18 + $0x70] sm:$0xff] }
  0x22   : > { %v349_v8 = vld [vmem:[%s1205_s18 + $0x80] sm:$0xff]  ;;  %346 = vst [vmem:[%s273_s19 + $0x30] sm:$0xff] %v345_v6  ;;  %348 = vst [vmem:[%s273_s19 + $0x38] sm:$0xff] %v347_v7  ;;  %v351_v9 = vld [vmem:[%s1205_s18 + $0x90] sm:$0xff] }
  0x23   : > { %350 = vst [vmem:[%s273_s19 + $0x40] sm:$0xff] %v349_v8  ;;  %v353_v10 = vld [vmem:[%s1205_s18 + $0xa0] sm:$0xff]  ;;  %v355_v11 = vld [vmem:[%s1205_s18 + $0xb0] sm:$0xff]  ;;  %352 = vst [vmem:[%s273_s19 + $0x48] sm:$0xff] %v351_v9 }
  0x24   : > { %354 = vst [vmem:[%s273_s19 + $0x50] sm:$0xff] %v353_v10  ;;  %356 = vst [vmem:[%s273_s19 + $0x58] sm:$0xff] %v355_v11  ;;  %v357_v12 = vld [vmem:[%s1205_s18 + $0xc0] sm:$0xff]  ;;  %v359_v13 = vld [vmem:[%s1205_s18 + $0xd0] sm:$0xff] }
  0x25   : > { %v361_v14 = vld [vmem:[%s1205_s18 + $0xe0] sm:$0xff]  ;;  %358 = vst [vmem:[%s273_s19 + $0x60] sm:$0xff] %v357_v12  ;;  %360 = vst [vmem:[%s273_s19 + $0x68] sm:$0xff] %v359_v13  ;;  %v363_v15 = vld [vmem:[%s1205_s18 + $0xf0] sm:$0xff] }
  0x26   : > { %362 = vst [vmem:[%s273_s19 + $0x70] sm:$0xff] %v361_v14  ;;  %364 = vst [vmem:[%s273_s19 + $0x78] sm:$0xff] %v363_v15 }
  0x27 PF: > { %p820_p7 = scmp.ge.s32.totalorder %s1102_s30, 1  ;;  %p384_p8 = scmp.lt.s32.totalorder %s1102_s30, 5 }
  0x29   : > { %p385_p9 = pnand %p820_p7, %p384_p8 }
  0x2a   : > { %s391_s20 = sand.u32 (!%p385_p9), 1, %s1078_s24   ;;  %p439_p10 = scmp.lt.s32.totalorder (!%p385_p9), %s1090_s27, 1 }
  0x2b   : > { %388 = sbr.rel (%p385_p9) target bundleno = 850 (0x352), region = 82  ;;  %s821_s21 = sshll.u32 (!%p385_p9), %s391_s20, 7 }
  0x2c   : > { %p446_p11 = scmp.lt.s32.totalorder (!%p385_p9), %s1086_s26, 1  ;;  %s823_s22 = sshll.u32 (!%p385_p9), %s1086_s26, 4 }
  0x2d   : > { %p450_p12 = scmp.lt.s32.totalorder (!%p385_p9), %s823_s22, 31  ;;  %s1252_s8 = scalar_lea.vmem (!%p385_p9), [#allocation3], %s821_s21 }
  0x2e   : > { %p826_p13 = scmp.ne.s32.totalorder (!%p385_p9), %s1086_s26, 0 }
  0x32   : > { %s1370_s27 = smov (!%p439_p10, %s1090_s27), 1  ;;  %s1372_s22 = smov (!%p450_p12, %s823_s22), 31 }
  0x33   : > { %s1231_s23 = scalar_select %p446_p11, %s1086_s26, 1 }
  0x34   : > { %s822_s10 = sshll.u32 %s1370_s27, 3  ;;  %s824_s20 = sshll.u32 %s1372_s22, 3  ;;  %v1104_v16 = vmov (!%p826_p13), 0.0  }
  0x35   : > { %s1236_s14 = scalar_lea.vmem %s1342_s0, %s822_s10  ;;  %s448_s17 = scalar_lea.vmem %s1344_s2, %s1231_s23  ;;  %466 = vst [vmem:[#allocation2] sm:$0xff] (!%p826_p13), %v1104_v16 }
  0x36   : > { %s1245_s19 = scalar_lea.vmem %s1349_s7, %s822_s10  ;;  %s1250_s27 = scalar_lea.vmem %s1345_s3, %s824_s20 }
  0x37   : > { %465 = sbr.rel (%p826_p13) target bundleno = 62 (0x3e), region = 90 }
  0x3e PF: > { %v468_v17 = vld [vmem:[%s1252_s8] sm:$0xff]  ;;  %v469_v18 = vld [vmem:[%s1252_s8 + $0x8] sm:$0xff]  ;;  %v470_v19 = vld [vmem:[%s1252_s8 + $0x10] sm:$0xff]  ;;  %v1105_v20 = vmov 0.0|0.0   ;;  %vm1106_vm0 = vmmov 0   ;;  %v1107_v23 = vmov 0.0  }
  0x3f   : > { %938 = vmatprep.subr.bf16.mxu0 %v1105_v20  ;;  %v939_v21 = vpack.c.bf16 %v469_v18, %v468_v17  ;;  %v471_v22 = vld [vmem:[%s1252_s8 + $0x18] sm:$0xff]  ;;  %900 = vmatprep.mubr.msk.f32.mxu0 %vm1106_vm0, %v1107_v23  ;;  %v472_v25 = vld [vmem:[%s1252_s8 + $0x20] sm:$0xff]  ;;  %v473_v26 = vld [vmem:[%s1252_s8 + $0x28] sm:$0xff]  ;;  %p828_p0 = scmp.ne.s32.totalorder %s1086_s26, 1 }
  0x40   : > { %962 = vmatprep.subr.bf16.mxu1 %v1105_v20  ;;  %935 = vmatprep.mubr.msk.f32.mxu1 %vm1106_vm0, %v1107_v23  ;;  %v942_v24 = vpack.c.bf16 %v471_v22, %v470_v19  ;;  %v563_v27 = vld [vmem:[%s1250_s27] sm:$0xff]  ;;  %v564_v28 = vld [vmem:[%s1250_s27 + $0x8] sm:$0xff]  ;;  %v565_v29 = vld [vmem:[%s1250_s27 + $0x10] sm:$0xff]  ;;  %v945_v31 = vpack.c.bf16 %v473_v26, %v472_v25 }
  0x41   : > { %940 = vmatpush3.bf16.msra.mxu0 %v939_v21  ;;  %v566_v30 = vld [vmem:[%s1250_s27 + $0x18] sm:$0xff]  ;;  %v963_v32 = vpack.c.bf16 %v564_v28, %v563_v27  ;;  %v475_v34 = vld [vmem:[%s1252_s8 + $0x38] sm:$0xff]  ;;  %v568_v37 = vld [vmem:[%s1250_s27 + $0x28] sm:$0xff] }
  0x42   : > { %941 = vmatprep.subr.bf16.mxu0 %v1105_v20  ;;  %v474_v33 = vld [vmem:[%s1252_s8 + $0x30] sm:$0xff]  ;;  %v966_v35 = vpack.c.bf16 %v566_v30, %v565_v29  ;;  %v567_v36 = vld [vmem:[%s1250_s27 + $0x20] sm:$0xff]  ;;  %v476_v39 = vld [vmem:[%s1252_s8 + $0x40] sm:$0xff] }
  0x43   : > { %964 = vmatpush3.bf16.msra.mxu1 %v963_v32  ;;  %v948_v38 = vpack.c.bf16 %v475_v34, %v474_v33  ;;  %v477_v40 = vld [vmem:[%s1252_s8 + $0x48] sm:$0xff]  ;;  %v969_v41 = vpack.c.bf16 %v568_v37, %v567_v36  ;;  %v570_v43 = vld [vmem:[%s1250_s27 + $0x38] sm:$0xff]  ;;  %v479_v46 = vld [vmem:[%s1252_s8 + $0x58] sm:$0xff] }
  0x44   : > { %965 = vmatprep.subr.bf16.mxu1 %v1105_v20  ;;  %v569_v42 = vld [vmem:[%s1250_s27 + $0x30] sm:$0xff]  ;;  %v951_v44 = vpack.c.bf16 %v477_v40, %v476_v39  ;;  %v478_v45 = vld [vmem:[%s1252_s8 + $0x50] sm:$0xff]  ;;  %v571_v48 = vld [vmem:[%s1250_s27 + $0x40] sm:$0xff] }
  0x45   : > { %943 = vmatpush3.bf16.msra.mxu0 %v942_v24  ;;  %v972_v47 = vpack.c.bf16 %v570_v43, %v569_v42  ;;  %v572_v49 = vld [vmem:[%s1250_s27 + $0x48] sm:$0xff]  ;;  %v954_v50 = vpack.c.bf16 %v479_v46, %v478_v45  ;;  %v481_v52 = vld [vmem:[%s1252_s8 + $0x68] sm:$0xff]  ;;  %v574_v55 = vld [vmem:[%s1250_s27 + $0x58] sm:$0xff] }
  0x46   : > { %944 = vmatprep.subr.bf16.mxu0 %v1105_v20  ;;  %v480_v51 = vld [vmem:[%s1252_s8 + $0x60] sm:$0xff]  ;;  %v975_v53 = vpack.c.bf16 %v572_v49, %v571_v48  ;;  %v573_v54 = vld [vmem:[%s1250_s27 + $0x50] sm:$0xff]  ;;  %v482_v57 = vld [vmem:[%s1252_s8 + $0x70] sm:$0xff] }
  0x47   : > { %967 = vmatpush3.bf16.msra.mxu1 %v966_v35  ;;  %v957_v56 = vpack.c.bf16 %v481_v52, %v480_v51  ;;  %v483_v58 = vld [vmem:[%s1252_s8 + $0x78] sm:$0xff]  ;;  %v978_v59 = vpack.c.bf16 %v574_v55, %v573_v54  ;;  %v576_v61 = vld [vmem:[%s1250_s27 + $0x68] sm:$0xff]  ;;  %v577_v1 = vld [vmem:[%s1250_s27 + $0x70] sm:$0xff] }
  0x48   : > { %968 = vmatprep.subr.bf16.mxu1 %v1105_v20  ;;  %v575_v60 = vld [vmem:[%s1250_s27 + $0x60] sm:$0xff]  ;;  %v960_v62 = vpack.c.bf16 %v483_v58, %v482_v57  ;;  %v578_v2 = vld [vmem:[%s1250_s27 + $0x78] sm:$0xff] }
  0x49   : > { %946 = vmatpush3.bf16.msra.mxu0 %v945_v31  ;;  %v981_v63 = vpack.c.bf16 %v576_v61, %v575_v60  ;;  %v467_v0 = vld [vmem:[%s1236_s14] sm:$0xff]  ;;  %v984_v3 = vpack.c.bf16 %v578_v2, %v577_v1 }
  0x4a   : > { %947 = vmatprep.subr.bf16.mxu0 %v1105_v20  ;;  %v827_v4 = vld [vmem:[%s448_s17] ss:$0 sm:$0xff] }
  0x4b   : > { %970 = vmatpush3.bf16.msra.mxu1 %v969_v41  ;;  %v562_v9 = vld [vmem:[#allocation2] sm:$0xff] }
  0x4c   : > { %971 = vmatprep.subr.bf16.mxu1 %v1105_v20  ;;  %v829_v14 = vld [vmem:[%s1346_s4] ss:$0 sm:$0xff] (!%p828_p0) }
  0x4d   : > { %949 = vmatpush3.bf16.msra.mxu0 %v948_v38  ;;  %v664_v15 = vld [vmem:[%s1236_s14] sm:$0xff] (!%p828_p0) }
  0x4e   : > { %950 = vmatprep.subr.bf16.mxu0 %v1105_v20  ;;  %v830_v26 = vld [vmem:[%s1347_s5] ss:$0 sm:$0xff] (!%p828_p0) }
  0x4f   : > { %973 = vmatpush3.bf16.msra.mxu1 %v972_v47  ;;  %v831_v28 = vld [vmem:[%s1348_s6] ss:$0 sm:$0xff] (!%p828_p0) }
  0x50   : > { %974 = vmatprep.subr.bf16.mxu1 %v1105_v20 }
  0x51   : > { %952 = vmatpush3.bf16.msra.mxu0 %v951_v44 }
  0x52   : > { %953 = vmatprep.subr.bf16.mxu0 %v1105_v20 }
  0x53   : > { %976 = vmatpush3.bf16.msra.mxu1 %v975_v53 }
  0x54   : > { %977 = vmatprep.subr.bf16.mxu1 %v1105_v20 }
  0x55   : > { %955 = vmatpush3.bf16.msra.mxu0 %v954_v50 }
  0x56   : > { %956 = vmatprep.subr.bf16.mxu0 %v1105_v20 }
  0x57   : > { %979 = vmatpush3.bf16.msra.mxu1 %v978_v59 }
  0x58   : > { %980 = vmatprep.subr.bf16.mxu1 %v1105_v20 }
  0x59   : > { %958 = vmatpush3.bf16.msra.mxu0 %v957_v56 }
  0x5a   : > { %959 = vmatprep.subr.bf16.mxu0 %v1105_v20 }
  0x5b   : > { %982 = vmatpush3.bf16.msra.mxu1 %v981_v63 }
  0x5c   : > { %983 = vmatprep.subr.bf16.mxu1 %v1105_v20 }
  0x5d   : > { %961 = vmatpush3.bf16.msra.mxu0 %v960_v62 }
  0x5f   : > { %985 = vmatpush3.bf16.msra.mxu1 %v984_v3 }
  0x60   : > { %901 = vmatmul.mubr.f32.vlgmr.msra.gmra.mrb[0].mxu0 %v467_v0 }
 0x133   : > { %v557_v5 = vpop.f32.mrb[0].mxu0 }
 0x134   : > { %v558_v6 = vadd.f32 %v827_v4, %v557_v5  ;;  %v902_v7 = vpop.f32.mrb[1].mxu0 }
 0x136   : > { %v561_v8 = vmax.f32 %v558_v6, 0.0 }
 0x138   : > { %936 = vmatmul.mubr.f32.vlgmr.msra.gmra.mrb[0].mxu1 %v561_v8 }
 0x208   : > { %654 = sbr.rel (%p828_p0) target bundleno = 850 (0x352), region = 94 }
 0x20b   : > { %v645_v10 = vpop.f32.mrb[0].mxu1 }
 0x20c   : > { %v649_v11 = vadd.f32 %v645_v10, %v562_v9  ;;  %v937_v12 = vpop.f32.mrb[1].mxu1 }
 0x20e   : > { %650 = vst [vmem:[#allocation2] sm:$0xff] %v649_v11 }
 0x215   : > { %v655_v13 = vld [vmem:[#allocation2] sm:$0xff] }
 0x216   : > { %v663_v16 = vadd.f32 %v829_v14, %v655_v13 }
 0x218   : > { %v665_v17 = vadd.f32 %v664_v15, %v663_v16 }
 0x21a   : > { %666 = vadd.xlane.f32.xlu0 %v665_v17 }
 0x2a7   : > { %v667_v18 = vpop.xlane.xlu0 %666 }
 0x2a8   : > { %v669_v19 = vmul.f32 0.0078125, %v667_v18 }
 0x2aa   : > { %v670_v20 = vsub.f32 %v665_v17, %v669_v19 }
 0x2ac   : > { %v671_v21 = vmul.f32 %v670_v20, %v670_v20 }
 0x2ae   : > { %672 = vadd.xlane.f32.xlu0 %v671_v21 }
 0x33b   : > { %v673_v22 = vpop.xlane.xlu0 %672 }
 0x33c   : > { %v674_v23 = vmul.f32 0.0078125, %v673_v22 }
 0x33e   : > { %v675_v24 = vadd.f32 1e-05, %v674_v23 }
 0x340   : > { %1046 = vrsqrt.f32 %v675_v24 }
 0x34a   : > { %v1047_v25 = vpop.eup %1046 }
 0x34b   : > { %v677_v27 = vmul.f32 %v1047_v25, %v670_v20 }
 0x34d   : > { %v685_v29 = vmul.f32 %v830_v26, %v677_v27 }
 0x34f   : > { %v693_v30 = vadd.f32 %v831_v28, %v685_v29 }
 0x351   : > { %694 = vst [vmem:[%s1245_s19] sm:$0xff] %v693_v30 }
 0x352 PF: > { %s17_s30 = sadd.s32 1, %s1102_s30   ;;  %s1355_s11 = sld [smem:[#allocation4_spill]] }
 0x353   : > { %p14_p1 = scmp.ge.s32.totalorder %s17_s30, 6   ;;  %s1356_s13 = sld [smem:[#allocation5_spill]] }
 0x354   : > { %s1357_s24 = smov %s1082_s25  ;;  %s1358_s25 = smov %s1197_s12 }
 0x355   : > { %s1359_s26 = smov %s1094_s28  ;;  %s1360_s27 = smov %s1098_s29 }
 0x356   :  { %16 = sbr.rel (!%p14_p1) target bundleno = 6 (0x6), region = 138 }
 0x358   : > { %s1361_s28 = smov %s1355_s11 }
 0x359   : > { %s1362_s29 = smov %s1356_s13 }

// kernel: transformer_forward.9
= control target key start
LH: loop header
LB: loop body
LE: loop exit
PB: predicated region body
PF: predicated region fallthrough
CT: control target
= control target key end

     0   :  { %v87_v0 = vmov 0.0   ;;  %vm38_vm0 = vcmask 1041409   ;;  %vm56_vm1 = vcmask 1041408   ;;  %vm74_vm2 = vcmask 1024   ;;  %s123_s0 = inlined_call_operand.vmem [shape: f32[2,8,128], index: 0, kind: input, shape index: {}]   ;;  %s124_s2 = inlined_call_operand.<no memory space> [shape: f32[1,1], index: 2, kind: input, shape index: {}]   ;;  %s125_s1 = inlined_call_operand.vmem [shape: f32[1,128], index: 1, kind: input, shape index: {}]   ;;  %s126_s3 = inlined_call_operand.vmem [shape: f32[2,1], index: 3, kind: output, shape index: {}]  }
   0x1   :  { %20 = vst [vmem:[#allocation2] sm:$0x3] %v87_v0  ;;  %v22_v1 = vld [vmem:[%s123_s0] sm:$0xff]  ;;  %v23_v2 = vld [vmem:[%s123_s0 + $0x8] sm:$0xff]  ;;  %v8_v3 = vstv %s124_s2 }
   0x2   :  { %v24_v4 = vrot.slane %v22_v1, 4  ;;  %v30_v5 = vrot.slane %v23_v2, 4  ;;  %9 = vst [vmem:[#allocation3] sm:$0x1] %v8_v3  ;;  %v80_v20 = vld [vmem:[%s125_s1] ss:$0 sm:$0xff] }
   0x4   :  { %v25_v6 = vadd.f32 %v24_v4, %v22_v1  ;;  %v31_v7 = vadd.f32 %v30_v5, %v23_v2 }
   0x6   :  { %v26_v8 = vrot.slane %v25_v6, 2  ;;  %v32_v9 = vrot.slane %v31_v7, 2 }
   0x8   :  { %v27_v10 = vadd.f32 %v26_v8, %v25_v6  ;;  %v33_v11 = vadd.f32 %v32_v9, %v31_v7  ;;  %v21_v14 = vld [vmem:[#allocation2] sm:$0x3] }
   0x9   :  { %v81_v24 = vld [vmem:[#allocation3] ss:$0 sm:$0xff] }
   0xa   :  { %v28_v12 = vrot.slane %v27_v10, 1  ;;  %v34_v13 = vrot.slane %v33_v11, 1 }
   0xc   :  { %v29_v15 = vadd.f32 %v28_v12, %v27_v10  ;;  %v35_v16 = vadd.f32 %v34_v13, %v33_v11 }
   0xe   :  { %v39_v17 = vsel %vm38_vm0, %v35_v16, %v29_v15 }
   0xf   :  { %v41_v18 = vadd.f32 %v39_v17, %v21_v14 }
  0x11   :  { %42 = vst [vmem:[#allocation2] sm:$0x3] %v41_v18 }
  0x18   :  { %v46_v19 = vld [vmem:[#allocation2] sm:$0x3] }
  0x19   :  { %v47_v21 = vmul.f32 0.125, %v46_v19 }
  0x1b   :  { %v55_v22 = vmul.f32 %v80_v20, %v47_v21 }
  0x1d   :  { %v57_v23 = vsel %vm56_vm1, %v55_v22, 0.0 }
  0x1e   :  { %58 = vadd.xlane.f32.xlu0 %v57_v23 }
  0xab   :  { %v59_v25 = vpop.xlane.xlu0 %58 }
  0xac   :  { %v67_v26 = vadd.f32 %v81_v24, %v59_v25 }
  0xae   :  { %v68_v27 = vsub.f32 0.0, %v67_v26 }
  0xb0   :  { %v69_v28 = vmul.f32 1.442695, %v68_v27 }
  0xb2   :  { %83 = vpow2.f32 %v69_v28 }
  0xbc   :  { %v84_v29 = vpop.eup %83 }
  0xbd   :  { %v71_v30 = vadd.f32 1.0, %v84_v29 }
  0xbf   :  { %85 = vrcp.f32 %v71_v30 }
  0xc9   :  { %v86_v31 = vpop.eup %85 }
  0xca   :  { %75 = vst.msk [vmem:[%s126_s3] sm:$0x3] %vm74_vm2, %v86_v31 }

</bundles_post_ra>
